<compile_context>
chip_gen: v7x
topology: tpu7x:2x2x1
jax: 0.10.0
libtpu: 0.0.40
codegen_flags: <defaults>
</compile_context>

<pallas_src>
import functools

import jax
import jax.numpy as jnp
from jax.experimental import pallas as pl
from jax.experimental.pallas import tpu as pltpu

# conv taps as (dy, dx) offsets relative to the output pixel (tap-major order,
# matching the (O, kh, kw, I) -> (O, 9*I) weight reshape).
_TAPS = tuple((dy, dx) for dy in (-1, 0, 1) for dx in (-1, 0, 1))


def _basic_block_kernel(*refs, W, Lp, C_in, taps_prestacked, identity_shortcut):
    """One batch-block per grid step, transposed lane-dense layout.

    Activations are (C, Lp) with Lp = pad128(Nb*H*W) on the lane axis; each
    conv is a single MXU dot of folded-BN weights (C_out, 9*C) against the
    tap-stacked activations (9*C, Lp)."""
    it = list(refs)
    masks_ref = it.pop(0)                              # (9, 1, Lp) border masks
    x1_ref = it.pop(0)                                 # (1, C_in or 9*C_in, Lp)
    w1_ref = it.pop(0)                                 # (C_out, 9*C_in)
    w2_ref = it.pop(0)                                 # (C_out, 9*C_out)
    ws_ref = it.pop(0) if not identity_shortcut else None
    bs_ref = it.pop(0) if not identity_shortcut else None
    b1_ref = it.pop(0)                                 # (C_out, 1) f32
    b2_ref = it.pop(0)                                 # (C_out, 1) f32
    o_ref = it.pop(0)                                  # (1, C_out, Lp)

    x1 = x1_ref[0]

    def tap_stack(src):
        # (C, Lp) -> (9*C, Lp): XLU lane rotations + precomputed border masks
        # (zero-padding of the conv reproduced exactly; cross-image leakage on
        # the folded batch axis is masked out the same way).
        parts = []
        for t, (dy, dx) in enumerate(_TAPS):
            off = dy * W + dx
            if off == 0:
                parts.append(src)                       # centre tap: no mask
            else:
                shifted = pltpu.roll(src, (-off) % Lp, axis=1)
                parts.append(shifted * masks_ref[t])
        return jnp.concatenate(parts, axis=0)

    # ---- conv1 (3x3, BN1 folded into weights) + ReLU; dropout1 = identity ----
    t1 = x1 if taps_prestacked else tap_stack(x1)
    out1 = jnp.maximum(
        jnp.dot(w1_ref[...], t1, preferred_element_type=jnp.float32)
        + b1_ref[...], 0.0)

    # ---- conv2 (3x3 stride 1, BN2 folded) + ReLU; dropout2 = identity ----
    t2 = tap_stack(out1.astype(w2_ref.dtype))
    out2 = jnp.maximum(
        jnp.dot(w2_ref[...], t2, preferred_element_type=jnp.float32)
        + b2_ref[...], 0.0)

    # ---- shortcut ----
    if identity_shortcut:
        sc = x1.astype(jnp.float32)
    else:
        # stride>1: the 1x1 stride-s conv input is exactly the centre-tap rows
        # of the prestacked input — no separate DMA stream needed.
        xsc = x1[4 * C_in:5 * C_in, :] if taps_prestacked else x1
        sc = (jnp.dot(ws_ref[...], xsc, preferred_element_type=jnp.float32)
              + bs_ref[...])

    o_ref[0] = jnp.maximum(out2 + sc, 0.0).astype(o_ref.dtype)


def basic_block_forward(x, params, *, stride=1, batch_block=None,
                        compute_dtype=jnp.float32, out_dtype=jnp.float32,
                        eps=1e-5):
    """BasicBlock forward (eval mode). x: (N, C_in, H, W) NCHW float32."""
    N, C_in, H, W = x.shape
    C_out = params['conv1_w'].shape[0]
    H_out = (H + 2 - 3) // stride + 1
    W_out = (W + 2 - 3) // stride + 1
    HW = H_out * W_out

    identity = params.get('shortcut_w') is None
    assert not (identity and stride != 1), \
        "identity shortcut requires stride == 1 (ResNet BasicBlock invariant)"

    # ---- lane-block (batch_block) selection: few, fat grid steps ----
    if batch_block is None:
        try:
            big_vmem = pltpu.get_tpu_info().vmem_capacity_bytes >= (100 << 20)
        except Exception:  # info unavailable -> assume the smaller (v7x) VMEM
            big_vmem = False
        target_lanes = 4096 if big_vmem else 2048
        # keep per-step VMEM (double-buffered tiles + tap-stack temps) modest
        itemsize = jnp.dtype(compute_dtype).itemsize
        cx = 9 * C_in if stride > 1 else C_in
        per_lane = ((2 * cx + 2 * C_out) * itemsize
                    + (9 * C_in + 9 * C_out + 4 * C_out) * 4)
        target_lanes = min(target_lanes, max(128, (20 << 20) // per_lane))
        cap = max(1, target_lanes // HW)
        if N >= 2:
            cap = min(cap, max(1, N // 2))   # G >= 2 keeps both v7x TCs busy
        batch_block = max(d for d in range(1, N + 1) if N % d == 0 and d <= cap)
    Nb = batch_block
    assert N % Nb == 0, "batch_block must divide N"
    G = N // Nb
    L = Nb * HW
    Lp = ((L + 127) // 128) * 128            # lane-dense: multiple of 128
    assert Lp % 128 == 0

    # ---- fold BatchNorm (running stats) into the conv weights ----
    def fold(w, bn):
        g, b, m, v = bn
        s = g / jnp.sqrt(v + eps)
        return w * s[:, None, None, None], b - m * s

    w1, b1 = fold(params['conv1_w'], params['bn1'])
    w2, b2 = fold(params['conv2_w'], params['bn2'])
    # (O, I, kh, kw) -> (O, kh, kw, I) -> (O, 9*I): tap-major, channel-minor.
    w1k = jnp.transpose(w1, (0, 2, 3, 1)).reshape(C_out, 9 * C_in).astype(compute_dtype)
    w2k = jnp.transpose(w2, (0, 2, 3, 1)).reshape(C_out, 9 * C_out).astype(compute_dtype)
    b1k = b1.reshape(C_out, 1).astype(jnp.float32)
    b2k = b2.reshape(C_out, 1).astype(jnp.float32)

    def to_lanes(a):
        # (N, C, H_out, W_out) -> (G, C, Lp): batch folded onto lanes + pad.
        C = a.shape[1]
        a = (a.reshape(G, Nb, C, HW).transpose(0, 2, 1, 3).reshape(G, C, L))
        if Lp != L:
            a = jnp.pad(a, ((0, 0), (0, 0), (0, Lp - L)))
        return a.astype(compute_dtype)

    # ---- host-side precomputed per-tap border masks (grid-invariant) ----
    lane = jnp.arange(Lp, dtype=jnp.int32)
    q = lane % HW
    hh = q // W_out
    ww = q % W_out
    masks = jnp.stack(
        [(hh + dy >= 0) & (hh + dy < H_out) & (ww + dx >= 0) & (ww + dx < W_out)
         for dy, dx in _TAPS], axis=0).reshape(9, 1, Lp).astype(compute_dtype)

    # ---- inputs ----
    taps_prestacked = stride > 1
    if not taps_prestacked:
        x_lanes = to_lanes(x)
        cx = C_in
    else:
        # Stride extraction in the wrapper (plain XLA): pre-gather the nine
        # stride-s taps so the kernel sees stride-1, lane-dense data only.
        x_pad = jnp.pad(x, ((0, 0), (0, 0), (1, 1), (1, 1)))
        taps = []
        for dy in range(3):
            for dx in range(3):
                taps.append(jax.lax.slice(
                    x_pad, (0, 0, dy, dx),
                    (N, C_in,
                     dy + (H_out - 1) * stride + 1,
                     dx + (W_out - 1) * stride + 1),
                    (1, 1, stride, stride)))
        x_taps = jnp.stack(taps, axis=1).reshape(N, 9 * C_in, H_out, W_out)
        x_lanes = to_lanes(x_taps)
        cx = 9 * C_in

    def full_spec(a):
        nd = a.ndim
        return pl.BlockSpec(tuple(a.shape), lambda g, nd=nd: (0,) * nd)

    inputs = [masks, x_lanes, w1k, w2k]
    in_specs = [full_spec(masks),
                pl.BlockSpec((1, cx, Lp), lambda g: (g, 0, 0)),
                full_spec(w1k), full_spec(w2k)]
    if not identity:
        ws, bs = fold(params['shortcut_w'], params['bn_s'])
        wsk = ws.reshape(C_out, C_in).astype(compute_dtype)
        bsk = bs.reshape(C_out, 1).astype(jnp.float32)
        inputs += [wsk, bsk]
        in_specs += [full_spec(wsk), full_spec(bsk)]
    inputs += [b1k, b2k]
    in_specs += [full_spec(b1k), full_spec(b2k)]

    kernel = functools.partial(
        _basic_block_kernel,
        W=W_out, Lp=Lp, C_in=C_in,
        taps_prestacked=taps_prestacked,
        identity_shortcut=identity)

    out = pl.pallas_call(
        kernel,
        out_shape=jax.ShapeDtypeStruct((G, C_out, Lp), out_dtype),
        grid_spec=pltpu.PrefetchScalarGridSpec(
            num_scalar_prefetch=0,
            grid=(G,),
            in_specs=in_specs,
            out_specs=pl.BlockSpec((1, C_out, Lp), lambda g: (g, 0, 0)),
        ),
        compiler_params=pltpu.CompilerParams(
            dimension_semantics=("parallel",)),
    )(*inputs)

    # (G, C_out, Lp) -> (N, C_out, H_out, W_out)   (layout plumbing in XLA;
    # skip this when chaining blocks in the lane-dense format).
    if Lp != L:
        out = out[:, :, :L]
    return (out.reshape(G, C_out, Nb, HW)
               .transpose(0, 2, 1, 3)
               .reshape(N, C_out, H_out, W_out))


def make_params(key, in_ch, out_ch, stride):
    """Deterministic parameters mirroring the PyTorch BasicBlock:
    conv weights in OIHW, BatchNorm (gamma, beta, running_mean, running_var)."""
    ks = jax.random.split(key, 6)

    def bn(k, C):
        k1, k2, k3, k4 = jax.random.split(k, 4)
        return (0.5 + jax.random.uniform(k1, (C,)),       # gamma
                0.1 * jax.random.normal(k2, (C,)),         # beta
                0.1 * jax.random.normal(k3, (C,)),         # running mean
                0.5 + jax.random.uniform(k4, (C,)))        # running var

    p = {
        'conv1_w': 0.1 * jax.random.normal(ks[0], (out_ch, in_ch, 3, 3)),
        'bn1': bn(ks[1], out_ch),
        'conv2_w': 0.1 * jax.random.normal(ks[2], (out_ch, out_ch, 3, 3)),
        'bn2': bn(ks[3], out_ch),
        'shortcut_w': None,
        'bn_s': None,
    }
    if stride != 1 or in_ch != out_ch:
        p['shortcut_w'] = 0.1 * jax.random.normal(ks[4], (out_ch, in_ch, 1, 1))
        p['bn_s'] = bn(ks[5], out_ch)
    return jax.tree_util.tree_map(lambda a: jnp.asarray(a, jnp.float32), p)


def reference_forward(x, params, *, stride=1, eps=1e-5):
    """Pure-JAX/XLA reference with identical eval-mode semantics."""
    dn = ('NCHW', 'OIHW', 'NCHW')

    def bn(y, bnp):
        g, b, m, v = bnp
        s = (g / jnp.sqrt(v + eps))[None, :, None, None]
        return (y - m[None, :, None, None]) * s + b[None, :, None, None]

    out = jax.lax.conv_general_dilated(x, params['conv1_w'], (stride, stride),
                                       ((1, 1), (1, 1)), dimension_numbers=dn)
    out = jnp.maximum(bn(out, params['bn1']), 0.0)
    out = jax.lax.conv_general_dilated(out, params['conv2_w'], (1, 1),
                                       ((1, 1), (1, 1)), dimension_numbers=dn)
    out = jnp.maximum(bn(out, params['bn2']), 0.0)
    if params['shortcut_w'] is None:
        sc = x
    else:
        sc = jax.lax.conv_general_dilated(x, params['shortcut_w'],
                                          (stride, stride), ((0, 0), (0, 0)),
                                          dimension_numbers=dn)
        sc = bn(sc, params['bn_s'])
    return jnp.maximum(out + sc, 0.0)


if __name__ == "__main__":
    key = jax.random.PRNGKey(0)
    kx1, kp1, kx2, kp2 = jax.random.split(key, 4)

    # Config A: stride=1, identity shortcut (AudioMLP layer1 / second blocks).
    xA = jax.random.normal(kx1, (8, 8, 16, 16), jnp.float32)
    pA = make_params(kp1, 8, 8, stride=1)
    yA = jax.block_until_ready(basic_block_forward(xA, pA, stride=1))
    rA = reference_forward(xA, pA, stride=1)
    assert yA.shape == rA.shape == (8, 8, 16, 16)
    assert jnp.allclose(yA, rA, atol=2e-4, rtol=2e-4), \
        f"config A max err {jnp.max(jnp.abs(yA - rA))}"

    # Config B: stride=2, projection shortcut (AudioMLP layer2/3/4 first blocks).
    xB = jax.random.normal(kx2, (8, 8, 32, 32), jnp.float32)
    pB = make_params(kp2, 8, 16, stride=2)
    yB = jax.block_until_ready(basic_block_forward(xB, pB, stride=2))
    rB = reference_forward(xB, pB, stride=2)
    assert yB.shape == rB.shape == (8, 16, 16, 16)
    assert jnp.allclose(yB, rB, atol=2e-4, rtol=2e-4), \
        f"config B max err {jnp.max(jnp.abs(yB - rB))}"

    # Config C: bf16 activations/weights (v6e/v7x fast path), f32 accumulation.
    yC = jax.block_until_ready(
        basic_block_forward(xA, pA, stride=1, compute_dtype=jnp.bfloat16))
    assert yC.shape == rA.shape
    assert jnp.allclose(yC, rA, atol=2e-1, rtol=5e-2), \
        f"config C (bf16) max err {jnp.max(jnp.abs(yC - rA))}"

    print("KERNEL_OK")
</pallas_src>

<mosaic_0001>
module attributes {stable_mosaic.version = 11 : i64} {
  func.func @_basic_block_kernel(%arg0: i32, %arg1: memref<9x1x1024xf32, #tpu.memory_space<vmem>>, %arg2: memref<1x8x1024xf32, #tpu.memory_space<vmem>>, %arg3: memref<8x72xf32, #tpu.memory_space<vmem>>, %arg4: memref<8x72xf32, #tpu.memory_space<vmem>>, %arg5: memref<8x1xf32, #tpu.memory_space<vmem>>, %arg6: memref<8x1xf32, #tpu.memory_space<vmem>>, %arg7: memref<1x8x1024xf32, #tpu.memory_space<vmem>>) attributes {dimension_semantics = [#tpu.dimension_semantics<parallel>], iteration_bounds = array<i64: 2>, scalar_prefetch = 0 : i64, scratch_operands = 0 : i64, tpu.core_type = #tpu.core_type<tc>, window_params = [{pipeline_mode = #tpu.pipeline_mode<synchronous>, transform_indices = @transform_0, window_bounds = array<i64: 9, 1, 1024>}, {transform_indices = @transform_1, window_bounds = array<i64: 1, 8, 1024>}, {pipeline_mode = #tpu.pipeline_mode<synchronous>, transform_indices = @transform_2, window_bounds = array<i64: 8, 72>}, {pipeline_mode = #tpu.pipeline_mode<synchronous>, transform_indices = @transform_3, window_bounds = array<i64: 8, 72>}, {pipeline_mode = #tpu.pipeline_mode<synchronous>, transform_indices = @transform_4, window_bounds = array<i64: 8, 1>}, {pipeline_mode = #tpu.pipeline_mode<synchronous>, transform_indices = @transform_5, window_bounds = array<i64: 8, 1>}, {transform_indices = @transform_6, window_bounds = array<i64: 1, 8, 1024>}]} {
    %c0 = arith.constant 0 : index
    %c0_0 = arith.constant 0 : index
    %c0_1 = arith.constant 0 : index
    %0 = vector.load %arg2[%c0, %c0_0, %c0_1] : memref<1x8x1024xf32, #tpu.memory_space<vmem>>, vector<1x8x1024xf32>
    %1 = vector.shape_cast %0 : vector<1x8x1024xf32> to vector<8x1024xf32>
    %c17_i32 = arith.constant 17 : i32
    %2 = tpu.dynamic_rotate %1 by %c17_i32 dim 1 : vector<8x1024xf32>, i32 -> vector<8x1024xf32>
    %c0_2 = arith.constant 0 : index
    %c0_3 = arith.constant 0 : index
    %c0_4 = arith.constant 0 : index
    %3 = vector.load %arg1[%c0_2, %c0_3, %c0_4] : memref<9x1x1024xf32, #tpu.memory_space<vmem>>, vector<1x1x1024xf32>
    %4 = vector.shape_cast %3 : vector<1x1x1024xf32> to vector<1x1024xf32>
    %5 = vector.broadcast %4 : vector<1x1024xf32> to vector<8x1024xf32>
    %6 = arith.mulf %2, %5 : vector<8x1024xf32>
    %c16_i32 = arith.constant 16 : i32
    %7 = tpu.dynamic_rotate %1 by %c16_i32 dim 1 : vector<8x1024xf32>, i32 -> vector<8x1024xf32>
    %c1 = arith.constant 1 : index
    %c0_5 = arith.constant 0 : index
    %c0_6 = arith.constant 0 : index
    %8 = vector.load %arg1[%c1, %c0_5, %c0_6] : memref<9x1x1024xf32, #tpu.memory_space<vmem>>, vector<1x1x1024xf32>
    %9 = vector.shape_cast %8 : vector<1x1x1024xf32> to vector<1x1024xf32>
    %10 = vector.broadcast %9 : vector<1x1024xf32> to vector<8x1024xf32>
    %11 = arith.mulf %7, %10 : vector<8x1024xf32>
    %c15_i32 = arith.constant 15 : i32
    %12 = tpu.dynamic_rotate %1 by %c15_i32 dim 1 : vector<8x1024xf32>, i32 -> vector<8x1024xf32>
    %c2 = arith.constant 2 : index
    %c0_7 = arith.constant 0 : index
    %c0_8 = arith.constant 0 : index
    %13 = vector.load %arg1[%c2, %c0_7, %c0_8] : memref<9x1x1024xf32, #tpu.memory_space<vmem>>, vector<1x1x1024xf32>
    %14 = vector.shape_cast %13 : vector<1x1x1024xf32> to vector<1x1024xf32>
    %15 = vector.broadcast %14 : vector<1x1024xf32> to vector<8x1024xf32>
    %16 = arith.mulf %12, %15 : vector<8x1024xf32>
    %c1_i32 = arith.constant 1 : i32
    %17 = tpu.dynamic_rotate %1 by %c1_i32 dim 1 : vector<8x1024xf32>, i32 -> vector<8x1024xf32>
    %c3 = arith.constant 3 : index
    %c0_9 = arith.constant 0 : index
    %c0_10 = arith.constant 0 : index
    %18 = vector.load %arg1[%c3, %c0_9, %c0_10] : memref<9x1x1024xf32, #tpu.memory_space<vmem>>, vector<1x1x1024xf32>
    %19 = vector.shape_cast %18 : vector<1x1x1024xf32> to vector<1x1024xf32>
    %20 = vector.broadcast %19 : vector<1x1024xf32> to vector<8x1024xf32>
    %21 = arith.mulf %17, %20 : vector<8x1024xf32>
    %c1023_i32 = arith.constant 1023 : i32
    %22 = tpu.dynamic_rotate %1 by %c1023_i32 dim 1 : vector<8x1024xf32>, i32 -> vector<8x1024xf32>
    %c5 = arith.constant 5 : index
    %c0_11 = arith.constant 0 : index
    %c0_12 = arith.constant 0 : index
    %23 = vector.load %arg1[%c5, %c0_11, %c0_12] : memref<9x1x1024xf32, #tpu.memory_space<vmem>>, vector<1x1x1024xf32>
    %24 = vector.shape_cast %23 : vector<1x1x1024xf32> to vector<1x1024xf32>
    %25 = vector.broadcast %24 : vector<1x1024xf32> to vector<8x1024xf32>
    %26 = arith.mulf %22, %25 : vector<8x1024xf32>
    %c1009_i32 = arith.constant 1009 : i32
    %27 = tpu.dynamic_rotate %1 by %c1009_i32 dim 1 : vector<8x1024xf32>, i32 -> vector<8x1024xf32>
    %c6 = arith.constant 6 : index
    %c0_13 = arith.constant 0 : index
    %c0_14 = arith.constant 0 : index
    %28 = vector.load %arg1[%c6, %c0_13, %c0_14] : memref<9x1x1024xf32, #tpu.memory_space<vmem>>, vector<1x1x1024xf32>
    %29 = vector.shape_cast %28 : vector<1x1x1024xf32> to vector<1x1024xf32>
    %30 = vector.broadcast %29 : vector<1x1024xf32> to vector<8x1024xf32>
    %31 = arith.mulf %27, %30 : vector<8x1024xf32>
    %c1008_i32 = arith.constant 1008 : i32
    %32 = tpu.dynamic_rotate %1 by %c1008_i32 dim 1 : vector<8x1024xf32>, i32 -> vector<8x1024xf32>
    %c7 = arith.constant 7 : index
    %c0_15 = arith.constant 0 : index
    %c0_16 = arith.constant 0 : index
    %33 = vector.load %arg1[%c7, %c0_15, %c0_16] : memref<9x1x1024xf32, #tpu.memory_space<vmem>>, vector<1x1x1024xf32>
    %34 = vector.shape_cast %33 : vector<1x1x1024xf32> to vector<1x1024xf32>
    %35 = vector.broadcast %34 : vector<1x1024xf32> to vector<8x1024xf32>
    %36 = arith.mulf %32, %35 : vector<8x1024xf32>
    %c1007_i32 = arith.constant 1007 : i32
    %37 = tpu.dynamic_rotate %1 by %c1007_i32 dim 1 : vector<8x1024xf32>, i32 -> vector<8x1024xf32>
    %c8 = arith.constant 8 : index
    %c0_17 = arith.constant 0 : index
    %c0_18 = arith.constant 0 : index
    %38 = vector.load %arg1[%c8, %c0_17, %c0_18] : memref<9x1x1024xf32, #tpu.memory_space<vmem>>, vector<1x1x1024xf32>
    %39 = vector.shape_cast %38 : vector<1x1x1024xf32> to vector<1x1024xf32>
    %40 = vector.broadcast %39 : vector<1x1024xf32> to vector<8x1024xf32>
    %41 = arith.mulf %37, %40 : vector<8x1024xf32>
    %42 = tpu.concatenate %6, %11, %16, %21, %1, %26, %31, %36, %41 in 0 : vector<8x1024xf32>, vector<8x1024xf32>, vector<8x1024xf32>, vector<8x1024xf32>, vector<8x1024xf32>, vector<8x1024xf32>, vector<8x1024xf32>, vector<8x1024xf32>, vector<8x1024xf32> -> vector<72x1024xf32>
    %c0_19 = arith.constant 0 : index
    %c0_20 = arith.constant 0 : index
    %43 = vector.load %arg3[%c0_19, %c0_20] : memref<8x72xf32, #tpu.memory_space<vmem>>, vector<8x72xf32>
    %cst = arith.constant dense<0.000000e+00> : vector<8x1024xf32>
    %44 = tpu.matmul %43, %42, %cst {dimension_numbers = #tpu.dot_dimension_numbers<[1], [0], [0], [1], [0, 0, 1, 1], [], []>} : vector<8x72xf32>, vector<72x1024xf32>, vector<8x1024xf32> -> vector<8x1024xf32>
    %c0_21 = arith.constant 0 : index
    %c0_22 = arith.constant 0 : index
    %45 = vector.load %arg5[%c0_21, %c0_22] : memref<8x1xf32, #tpu.memory_space<vmem>>, vector<8x1xf32>
    %46 = vector.broadcast %45 : vector<8x1xf32> to vector<8x1024xf32>
    %47 = arith.addf %44, %46 : vector<8x1024xf32>
    %cst_23 = arith.constant 0.000000e+00 : f32
    %48 = vector.broadcast %cst_23 : f32 to vector<8x1024xf32>
    %49 = arith.maximumf %47, %48 : vector<8x1024xf32>
    %c17_i32_24 = arith.constant 17 : i32
    %50 = tpu.dynamic_rotate %49 by %c17_i32_24 dim 1 : vector<8x1024xf32>, i32 -> vector<8x1024xf32>
    %c0_25 = arith.constant 0 : index
    %c0_26 = arith.constant 0 : index
    %c0_27 = arith.constant 0 : index
    %51 = vector.load %arg1[%c0_25, %c0_26, %c0_27] : memref<9x1x1024xf32, #tpu.memory_space<vmem>>, vector<1x1x1024xf32>
    %52 = vector.shape_cast %51 : vector<1x1x1024xf32> to vector<1x1024xf32>
    %53 = vector.broadcast %52 : vector<1x1024xf32> to vector<8x1024xf32>
    %54 = arith.mulf %50, %53 : vector<8x1024xf32>
    %c16_i32_28 = arith.constant 16 : i32
    %55 = tpu.dynamic_rotate %49 by %c16_i32_28 dim 1 : vector<8x1024xf32>, i32 -> vector<8x1024xf32>
    %c1_29 = arith.constant 1 : index
    %c0_30 = arith.constant 0 : index
    %c0_31 = arith.constant 0 : index
    %56 = vector.load %arg1[%c1_29, %c0_30, %c0_31] : memref<9x1x1024xf32, #tpu.memory_space<vmem>>, vector<1x1x1024xf32>
    %57 = vector.shape_cast %56 : vector<1x1x1024xf32> to vector<1x1024xf32>
    %58 = vector.broadcast %57 : vector<1x1024xf32> to vector<8x1024xf32>
    %59 = arith.mulf %55, %58 : vector<8x1024xf32>
    %c15_i32_32 = arith.constant 15 : i32
    %60 = tpu.dynamic_rotate %49 by %c15_i32_32 dim 1 : vector<8x1024xf32>, i32 -> vector<8x1024xf32>
    %c2_33 = arith.constant 2 : index
    %c0_34 = arith.constant 0 : index
    %c0_35 = arith.constant 0 : index
    %61 = vector.load %arg1[%c2_33, %c0_34, %c0_35] : memref<9x1x1024xf32, #tpu.memory_space<vmem>>, vector<1x1x1024xf32>
    %62 = vector.shape_cast %61 : vector<1x1x1024xf32> to vector<1x1024xf32>
    %63 = vector.broadcast %62 : vector<1x1024xf32> to vector<8x1024xf32>
    %64 = arith.mulf %60, %63 : vector<8x1024xf32>
    %c1_i32_36 = arith.constant 1 : i32
    %65 = tpu.dynamic_rotate %49 by %c1_i32_36 dim 1 : vector<8x1024xf32>, i32 -> vector<8x1024xf32>
    %c3_37 = arith.constant 3 : index
    %c0_38 = arith.constant 0 : index
    %c0_39 = arith.constant 0 : index
    %66 = vector.load %arg1[%c3_37, %c0_38, %c0_39] : memref<9x1x1024xf32, #tpu.memory_space<vmem>>, vector<1x1x1024xf32>
    %67 = vector.shape_cast %66 : vector<1x1x1024xf32> to vector<1x1024xf32>
    %68 = vector.broadcast %67 : vector<1x1024xf32> to vector<8x1024xf32>
    %69 = arith.mulf %65, %68 : vector<8x1024xf32>
    %c1023_i32_40 = arith.constant 1023 : i32
    %70 = tpu.dynamic_rotate %49 by %c1023_i32_40 dim 1 : vector<8x1024xf32>, i32 -> vector<8x1024xf32>
    %c5_41 = arith.constant 5 : index
    %c0_42 = arith.constant 0 : index
    %c0_43 = arith.constant 0 : index
    %71 = vector.load %arg1[%c5_41, %c0_42, %c0_43] : memref<9x1x1024xf32, #tpu.memory_space<vmem>>, vector<1x1x1024xf32>
    %72 = vector.shape_cast %71 : vector<1x1x1024xf32> to vector<1x1024xf32>
    %73 = vector.broadcast %72 : vector<1x1024xf32> to vector<8x1024xf32>
    %74 = arith.mulf %70, %73 : vector<8x1024xf32>
    %c1009_i32_44 = arith.constant 1009 : i32
    %75 = tpu.dynamic_rotate %49 by %c1009_i32_44 dim 1 : vector<8x1024xf32>, i32 -> vector<8x1024xf32>
    %c6_45 = arith.constant 6 : index
    %c0_46 = arith.constant 0 : index
    %c0_47 = arith.constant 0 : index
    %76 = vector.load %arg1[%c6_45, %c0_46, %c0_47] : memref<9x1x1024xf32, #tpu.memory_space<vmem>>, vector<1x1x1024xf32>
    %77 = vector.shape_cast %76 : vector<1x1x1024xf32> to vector<1x1024xf32>
    %78 = vector.broadcast %77 : vector<1x1024xf32> to vector<8x1024xf32>
    %79 = arith.mulf %75, %78 : vector<8x1024xf32>
    %c1008_i32_48 = arith.constant 1008 : i32
    %80 = tpu.dynamic_rotate %49 by %c1008_i32_48 dim 1 : vector<8x1024xf32>, i32 -> vector<8x1024xf32>
    %c7_49 = arith.constant 7 : index
    %c0_50 = arith.constant 0 : index
    %c0_51 = arith.constant 0 : index
    %81 = vector.load %arg1[%c7_49, %c0_50, %c0_51] : memref<9x1x1024xf32, #tpu.memory_space<vmem>>, vector<1x1x1024xf32>
    %82 = vector.shape_cast %81 : vector<1x1x1024xf32> to vector<1x1024xf32>
    %83 = vector.broadcast %82 : vector<1x1024xf32> to vector<8x1024xf32>
    %84 = arith.mulf %80, %83 : vector<8x1024xf32>
    %c1007_i32_52 = arith.constant 1007 : i32
    %85 = tpu.dynamic_rotate %49 by %c1007_i32_52 dim 1 : vector<8x1024xf32>, i32 -> vector<8x1024xf32>
    %c8_53 = arith.constant 8 : index
    %c0_54 = arith.constant 0 : index
    %c0_55 = arith.constant 0 : index
    %86 = vector.load %arg1[%c8_53, %c0_54, %c0_55] : memref<9x1x1024xf32, #tpu.memory_space<vmem>>, vector<1x1x1024xf32>
    %87 = vector.shape_cast %86 : vector<1x1x1024xf32> to vector<1x1024xf32>
    %88 = vector.broadcast %87 : vector<1x1024xf32> to vector<8x1024xf32>
    %89 = arith.mulf %85, %88 : vector<8x1024xf32>
    %90 = tpu.concatenate %54, %59, %64, %69, %49, %74, %79, %84, %89 in 0 : vector<8x1024xf32>, vector<8x1024xf32>, vector<8x1024xf32>, vector<8x1024xf32>, vector<8x1024xf32>, vector<8x1024xf32>, vector<8x1024xf32>, vector<8x1024xf32>, vector<8x1024xf32> -> vector<72x1024xf32>
    %c0_56 = arith.constant 0 : index
    %c0_57 = arith.constant 0 : index
    %91 = vector.load %arg4[%c0_56, %c0_57] : memref<8x72xf32, #tpu.memory_space<vmem>>, vector<8x72xf32>
    %cst_58 = arith.constant dense<0.000000e+00> : vector<8x1024xf32>
    %92 = tpu.matmul %91, %90, %cst_58 {dimension_numbers = #tpu.dot_dimension_numbers<[1], [0], [0], [1], [0, 0, 1, 1], [], []>} : vector<8x72xf32>, vector<72x1024xf32>, vector<8x1024xf32> -> vector<8x1024xf32>
    %c0_59 = arith.constant 0 : index
    %c0_60 = arith.constant 0 : index
    %93 = vector.load %arg6[%c0_59, %c0_60] : memref<8x1xf32, #tpu.memory_space<vmem>>, vector<8x1xf32>
    %94 = vector.broadcast %93 : vector<8x1xf32> to vector<8x1024xf32>
    %95 = arith.addf %92, %94 : vector<8x1024xf32>
    %cst_61 = arith.constant 0.000000e+00 : f32
    %96 = vector.broadcast %cst_61 : f32 to vector<8x1024xf32>
    %97 = arith.maximumf %95, %96 : vector<8x1024xf32>
    %98 = arith.addf %97, %1 : vector<8x1024xf32>
    %cst_62 = arith.constant 0.000000e+00 : f32
    %99 = vector.broadcast %cst_62 : f32 to vector<8x1024xf32>
    %100 = arith.maximumf %98, %99 : vector<8x1024xf32>
    %c0_63 = arith.constant 0 : index
    %c0_64 = arith.constant 0 : index
    %c0_65 = arith.constant 0 : index
    %101 = vector.load %arg7[%c0_63, %c0_64, %c0_65] : memref<1x8x1024xf32, #tpu.memory_space<vmem>>, vector<1x8x1024xf32>
    %102 = vector.shape_cast %101 : vector<1x8x1024xf32> to vector<8x1024xf32>
    %103 = vector.shape_cast %100 : vector<8x1024xf32> to vector<1x8x1024xf32>
    tpu.vector_store %arg7[%c0_63, %c0_64, %c0_65], %103 {strides = array<i32>} : memref<1x8x1024xf32, #tpu.memory_space<vmem>>, vector<1x8x1024xf32>,
    return
  }
  func.func @transform_0(%arg0: i32) -> (i32, i32, i32) {
    %c0_i32 = arith.constant 0 : i32
    %c0_i32_0 = arith.constant 0 : i32
    %c0_i32_1 = arith.constant 0 : i32
    %c0_i32_2 = arith.constant 0 : i32
    return %c0_i32, %c0_i32_0, %c0_i32_1 : i32, i32, i32
  }
  func.func @transform_1(%arg0: i32) -> (i32, i32, i32) {
    %c0_i32 = arith.constant 0 : i32
    %c0_i32_0 = arith.constant 0 : i32
    %c0_i32_1 = arith.constant 0 : i32
    return %arg0, %c0_i32, %c0_i32_0 : i32, i32, i32
  }
  func.func @transform_2(%arg0: i32) -> (i32, i32) {
    %c0_i32 = arith.constant 0 : i32
    %c0_i32_0 = arith.constant 0 : i32
    %c0_i32_1 = arith.constant 0 : i32
    return %c0_i32, %c0_i32_0 : i32, i32
  }
  func.func @transform_3(%arg0: i32) -> (i32, i32) {
    %c0_i32 = arith.constant 0 : i32
    %c0_i32_0 = arith.constant 0 : i32
    %c0_i32_1 = arith.constant 0 : i32
    return %c0_i32, %c0_i32_0 : i32, i32
  }
  func.func @transform_4(%arg0: i32) -> (i32, i32) {
    %c0_i32 = arith.constant 0 : i32
    %c0_i32_0 = arith.constant 0 : i32
    %c0_i32_1 = arith.constant 0 : i32
    return %c0_i32, %c0_i32_0 : i32, i32
  }
  func.func @transform_5(%arg0: i32) -> (i32, i32) {
    %c0_i32 = arith.constant 0 : i32
    %c0_i32_0 = arith.constant 0 : i32
    %c0_i32_1 = arith.constant 0 : i32
    return %c0_i32, %c0_i32_0 : i32, i32
  }
  func.func @transform_6(%arg0: i32) -> (i32, i32, i32) {
    %c0_i32 = arith.constant 0 : i32
    %c0_i32_0 = arith.constant 0 : i32
    %c0_i32_1 = arith.constant 0 : i32
    return %arg0, %c0_i32, %c0_i32_0 : i32, i32, i32
  }
}

</mosaic_0001>

<bundles_post_ra>
// kernel: tpu_custom_call.1
= control target key start
LH: loop header
LB: loop body
LE: loop exit
PB: predicated region body
PF: predicated region fallthrough
CT: control target
= control target key end

     0   :  { %11 = vsyncpa [#allocation3], 0  ;;  %s3799_s0 = inlined_call_operand.hbm [shape: f32[9,1,1024], index: 0, kind: input, shape index: {}]   ;;  %s3800_s1 = inlined_call_operand.hbm [shape: f32[2,8,1024], index: 1, kind: input, shape index: {}]   ;;  %s3801_s2 = inlined_call_operand.vmem [shape: f32[8,72], index: 2, kind: input, shape index: {}]   ;;  %s3802_s3 = inlined_call_operand.vmem [shape: f32[8,72], index: 3, kind: input, shape index: {}]   ;;  %s3803_s4 = inlined_call_operand.vmem [shape: f32[8,1], index: 4, kind: input, shape index: {}]   ;;  %s3804_s5 = inlined_call_operand.vmem [shape: f32[8,1], index: 5, kind: input, shape index: {}]   ;;  %s3805_s6 = inlined_call_operand.hbm [shape: f32[2,8,1024], index: 6, kind: output, shape index: {}]  }
   0x1   :  { %12 = vsyncpa [#allocation6], 0 }
   0x2   :  { %14 = vsyncpa [#allocation6 + $0x1], 0 }
   0x3   :  { %15 = vsyncpa [#allocation4], 0 }
   0x4   :  { %17 = vsyncpa [#allocation4 + $0x1], 0  ;;  %s2294_s21 = smov 0   ;;  %s2296_s22 = smov 0  }
   0x5   :  { %s2298_s23 = smov 0   ;;  %s2300_s24 = smov 0  }
   0x6 LB: > { %s2315_s25 = sadd.s32 4294967295, %s2242_s24   ;;  %s1882_s26 = sadd.s32 4294967294, %s2242_s24   ;;  %s2242_s24 = sphi %s2300_s24, %s3977_s24   ;;  %s2238_s23 = sphi %s2298_s23, %s3976_s23   ;;  %s2234_s22 = sphi %s2296_s22, %s3975_s22   ;;  %s2230_s21 = sphi %s2294_s21, %s3974_s21  }
   0x7   : > { %p64_p0 = scmp.ne.s32.totalorder %s2234_s22, %s2230_s21  ;;  %p3806_p1 = scmp.eq.s32.totalorder %s2315_s25, 0 }
   0x8   : > { %p178_p3 = scmp.eq.s32.totalorder %s1882_s26, 1  ;;  %p1883_p5 = scmp.ge.s32.totalorder %s2242_s24, 1 }
   0x9   : > { %p2324_p4 = por %p3806_p1, %p64_p0  ;;  %p185_p7 = scmp.lt.s32.totalorder %s2242_s24, 3 }
   0xa   : > { %p2329_p6 = por %p178_p3, %p64_p0  ;;  %s2244_s30 = smov [#allocation2]  }
   0xb   : > { %s3860_s27 = scalar_select %p2324_p4, 1, 0 }
   0xc   : > { %s3861_s28 = scalar_select %p2329_p6, 1, 0 }
   0xd   : > { %p2334_p8 = pnand %p1883_p5, %p185_p7  ;;  %s197_s7 = sshll.u32 %s2244_s30, 4  ;;  %s2338_s7 = int_to_ptr.vmem [resolvable:$true] %s197_s7 }
   0xe   : > { %s2350_s9 = sadd.s32 1, %s2242_s24   ;;  %s51_s10 = sadd.s32 1, %s2238_s23 }
   0xf   : > { %s3862_s29 = scalar_select %p2334_p8, 1, 0 }
  0x10   : > { %p2044_p9 = pneg %p2334_p8  ;;  %s48_s11 = ssub.s32 %s2242_s24, %s2350_s9 }
  0x11   : > { %s2114_s14 = scalar_lea.hbm %s3799_s0, 1152 }
  0x12   : > { %p2345_p11 = pnand %p2044_p9, %p3806_p1  ;;  %p2115_p12 = scmp.ne.s32.totalorder %s3799_s0, %s2114_s14 }
  0x13   : > { %p2121_p5 = scmp.lt.u32.totalorder %s2114_s14, %s3799_s0 }
  0x14   : > { %p2116_p13 = pneg %p2345_p11 }
  0x16   : > { %p2117_p0 = pnand %p2116_p13, %p2115_p12 }
  0x18   : > { %p2118_p3 = pneg %p2117_p0 }
  0x1a   : > { %p2123_p7 = pnand %p2121_p5, %p2118_p3 }
  0x1c   : > { %2126 = shalt.err (!%p2123_p7)
}
  0x1d   : > { %s2127_s19 = scalar_lea.vmem %s2338_s7, 1152  ;;  %p2135_p2 = scmp.lt.s32.totalorder %s2338_s7, %s2338_s7 }
  0x1e   : > { %p2128_p9 = scmp.ne.s32.totalorder %s2338_s7, %s2127_s19  ;;  %p2136_p6 = scmp.lt.s32.totalorder %s2127_s19, %s2127_s19 }
  0x20   : > { %p2130_p10 = pnand %p2128_p9, %p2116_p13  ;;  %p2137_p4 = por %p2136_p6, %p2135_p2 }
  0x22   : > { %p2131_p1 = pneg %p2130_p10 }
  0x24   : > { %p2138_p8 = pnand %p2137_p4, %p2131_p1 }
  0x26   : > { %2141 = shalt.err (!%p2138_p8)
}
  0x27   : > { %s2245_s20 = smov 128   ;;  %s2246_s26 = smov 8  }
  0x28   : > { %2047 = dma.hbm_to_vmem [thread:$0]  (!%p2345_p11), %s3799_s0, 1152, %s2338_s7, [#allocation3], %s2245_s20, %s2245_s20, %s2246_s26  }
  0x29   : > { %p49_p2 = scmp.eq.s32.totalorder %s48_s11, 0  ;;  %p58_p1 = scmp.ne.s32.totalorder %s2238_s23, %s2234_s22 }
  0x2a   : > { %p59_p4 = scmp.eq.s32.totalorder %s2242_s24, 0  ;;  %p2057_p6 = scmp.lt.s32.totalorder %s2242_s24, 2 }
  0x2b   : > { %s2381_s13 = scalar_select %p49_p2, %s2238_s23, %s51_s10  }
  0x2c   : > { %p60_p8 = por %p59_p4, %p58_p1  ;;  %p3864_p10 = scmp.eq.s32.totalorder %s2315_s25, 1 }
  0x2d   : > { %s223_s15 = sand.u32 1, %s2238_s23   ;;  %s1906_s16 = sshll.u32 %s2242_s24, 10 }
  0x2e   : > { %p2385_p12 = por %p3864_p10, %p58_p1  ;;  %s1886_s17 = sshll.u32 %s223_s15, 6 }
  0x2f   : > { %s2394_s19 = scalar_lea.hbm %s3800_s1, %s1906_s16  ;;  %s227_s7 = scalar_lea.vmem [#allocation5], %s1886_s17 }
  0x30   : > { %s235_s10 = sshll.u32 %s227_s7, 4  ;;  %p2396_p11 = pnand %p2057_p6, %p60_p8  ;;  %s2400_s10 = int_to_ptr.vmem [resolvable:$true] %s235_s10 }
  0x31   : > { %s224_s20 = scalar_lea.sflag [#allocation6], %s223_s15  ;;  %s2142_s26 = scalar_lea.hbm %s2394_s19, 1024 }
  0x32   : > { %p2143_p13 = scmp.ne.s32.totalorder %s2394_s19, %s2142_s26  ;;  %p2144_p0 = pneg %p2396_p11 }
  0x33   : > { %s2147_s16 = scalar_lea.hbm %s3800_s1, 2048  ;;  %p2148_p7 = scmp.lt.u32.totalorder %s2394_s19, %s3800_s1 }
  0x34   : > { %p2145_p3 = pnand %p2144_p0, %p2143_p13  ;;  %p2149_p9 = scmp.lt.u32.totalorder %s2147_s16, %s2142_s26 }
  0x35   : > { %p2151_p1 = scmp.lt.u32.totalorder %s2142_s26, %s2394_s19 }
  0x36   : > { %p2146_p5 = pneg %p2145_p3  ;;  %p2150_p2 = por %p2149_p9, %p2148_p7 }
  0x38   : > { %p2152_p4 = por %p2151_p1, %p2150_p2 }
  0x3a   : > { %p2153_p6 = pnand %p2152_p4, %p2146_p5 }
  0x3c   : > { %2156 = shalt.err (!%p2153_p6)
}
  0x3d   : > { %s2157_s15 = scalar_lea.vmem %s2400_s10, 1024  ;;  %s2247_s18 = smov [#allocation5]  }
  0x3e   : > { %p2158_p8 = scmp.ne.s32.totalorder %s2400_s10, %s2157_s15  ;;  %s2162_s7 = sshll.u32 %s2247_s18, 4  ;;  %s2163_s7 = int_to_ptr.vmem [resolvable:$false] %s2162_s7 }
  0x3f   : > { %s2164_s30 = scalar_lea.vmem %s2163_s7, 2048  ;;  %p2165_p3 = scmp.lt.s32.totalorder %s2400_s10, %s2163_s7 }
  0x40   : > { %p2160_p10 = pnand %p2158_p8, %p2144_p0  ;;  %p2166_p7 = scmp.lt.s32.totalorder %s2164_s30, %s2157_s15 }
  0x42   : > { %p2161_p13 = pneg %p2160_p10  ;;  %p2167_p9 = por %p2166_p7, %p2165_p3 }
  0x44   : > { %p2168_p2 = pnand %p2167_p9, %p2161_p13 }
  0x46   : > { %2171 = shalt.err (!%p2168_p2)
}
  0x47   : > { %2051 = dma.hbm_to_vmem [thread:$0]  (!%p2396_p11), %s2394_s19, 1024, %s2400_s10, %s224_s20  }
  0x48   : > { %p3867_p5 = scmp.ne.s32.totalorder %s3862_s29, 0 }
  0x4a   : > { %244 = sbr.rel (%p3867_p5) target bundleno = 1007 (0x3ef), region = 44 }
  0x51   : > { %p3868_p0 = scmp.eq.s32.totalorder %s2315_s25, 0 }
  0x53   : > { %2217 = dma.done.wait (%p3868_p0), [#allocation3], 1152   ;;  %p3869_p1 = pmov %p3868_p0 }
  0x54   : > { %s2434_s26 = sand.u32 1, %s2234_s22   ;;  %p3870_p11 = scmp.ne.s32.totalorder %s3860_s27, 0 }
  0x55   : > { %2219 = vsyncadd (%p3869_p1), [#allocation3], 4294966144  ;;  %s1891_s11 = sshll.u32 %s2434_s26, 6  ;;  %s251_s12 = scalar_lea.sflag [#allocation6], %s2434_s26 }
  0x56   : > { %s2440_s19 = scalar_lea.vmem [#allocation5], %s1891_s11 }
  0x57   : > { %2221 = dma.done.wait (%p3870_p11), %s251_s12, 1024  }
  0x58   : > { %2223 = vsyncadd (%p3870_p11), %s251_s12, 4294966272  ;;  %v2447_v0 = vld [vmem:[%s2440_s19 + $0x10] sm:$0xff]  ;;  %s2248_s29 = smov 16   ;;  %s2249_s10 = smov 17   ;;  %v2454_v1 = vld [vmem:[%s2440_s19 + $0x18] sm:$0xff]  ;;  %v3809_v8 = vmov 0.0   ;;  %v307_v9 = vlaneseq }
  0x59   : > { %372 = vrot.lane.b32.xlu1 %v2447_v0, %s2248_s29  ;;  %295 = vrot.lane.b32.xlu0 %v2447_v0, %s2249_s10  ;;  %v2461_v2 = vld [vmem:[%s2440_s19 + $0x8] sm:$0xff]  ;;  %s2250_s27 = smov 15   ;;  %s2251_s20 = smov 1   ;;  %v2480_v3 = vld [vmem:[%s2440_s19] sm:$0xff]  ;;  %v2595_v13 = vld [vmem:[#allocation2] sm:$0xff]  ;;  %v2257_v40 = vmov 0  }
  0x5a   : > { %v2487_v4 = vld [vmem:[%s2440_s19 + $0x20] sm:$0xff]  ;;  %s2252_s16 = smov 127   ;;  %v2494_v5 = vld [vmem:[%s2440_s19 + $0x38] sm:$0xff]  ;;  %s2253_s17 = smov 113   ;;  %v2525_v6 = vld [vmem:[%s2440_s19 + $0x30] sm:$0xff]  ;;  %1046 = vmatprep.mubr.f32.mxu1 %v3809_v8  ;;  %975 = vmatprep.mubr.f32.mxu0 %v3809_v8  ;;  %v2584_v10 = vshrl.u32 %v307_v9, 7 }
  0x5b   : > { %s2254_s8 = smov 112   ;;  %s2255_s15 = smov 111   ;;  %v2536_v7 = vld [vmem:[%s2440_s19 + $0x28] sm:$0xff]  ;;  %v2590_v11 = vand.u32 127, %v307_v9  ;;  %v2597_v14 = vld [vmem:[#allocation2 + $0x8] sm:$0xff]  ;;  %v2652_v36 = vld [vmem:[#allocation2 + $0x18] sm:$0xff]  ;;  %2105 = vset.pattern.permute.xlu0 %v2257_v40 }
  0x5c   : > { %v2593_v12 = vsub.s32 3, %v2584_v10  ;;  %v2600_v17 = vsub.s32 2, %v2584_v10  ;;  %v2650_v35 = vld [vmem:[#allocation2 + $0x10] sm:$0xff]  ;;  %v901_v41 = vld [vmem:[%s3803_s4] sm:$0xff]  ;;  %v2688_v52 = vsub.s32 1, %v2584_v10  ;;  %v2704_v62 = vld [vmem:[#allocation2 + $0x28] sm:$0xff] }
  0x5d   : > { %374 = vrot.lane.b32.xlu1 %v2454_v1, %s2248_s29  ;;  %297 = vrot.lane.b32.xlu0 %v2454_v1, %s2249_s10  ;;  %vm384_vm0 = vcmp.lt.s32.totalorder %v2590_v11, 16  ;;  %vm309_vm1 = vcmp.lt.s32.totalorder %v2590_v11, 17  ;;  %vm460_vm2 = vcmp.lt.s32.totalorder %v2590_v11, 15  ;;  %vm536_vm3 = vcmp.lt.s32.totalorder %v2590_v11, 1  ;;  %s2258_s7 = smov [#allocation7]  }
  0x5e   : > { %v2610_v18 = vrot.slane %v2595_v13, %v2593_v12  ;;  %v2614_v19 = vrot.slane %v2597_v14, %v2593_v12  ;;  %v2628_v24 = vrot.slane %v2595_v13, %v2600_v17  ;;  %v2638_v27 = vrot.slane %v2597_v14, %v2600_v17  ;;  %s2176_s30 = sshll.u32 %s2258_s7, 4  ;;  %s2177_s30 = int_to_ptr.vmem [resolvable:$false] %s2176_s30 }
  0x5f   : > { %v2662_v42 = vrot.slane %v2650_v35, %v2593_v12  ;;  %v2667_v43 = vrot.slane %v2652_v36, %v2593_v12  ;;  %v2679_v48 = vrot.slane %v2652_v36, %v2600_v17  ;;  %v2685_v51 = vrot.slane %v2650_v35, %v2600_v17  ;;  %s2178_s12 = scalar_lea.vmem %s2177_s30, 2048 }
  0x60   : > { %v2698_v60 = vrot.slane %v2595_v13, %v2688_v52  ;;  %v2702_v61 = vrot.slane %v2597_v14, %v2688_v52  ;;  %vm612_vm4 = vcmp.lt.s32.totalorder %v2590_v11, 127  ;;  %vm688_vm5 = vcmp.lt.s32.totalorder %v2590_v11, 113 }
  0x61   : > { %370 = vrot.lane.b32.xlu1 %v2461_v2, %s2248_s29  ;;  %293 = vrot.lane.b32.xlu0 %v2461_v2, %s2249_s10  ;;  %vm764_vm6 = vcmp.lt.s32.totalorder %v2590_v11, 112  ;;  %vm840_vm7 = vcmp.lt.s32.totalorder %v2590_v11, 111  ;;  %vm907_vm8 = vcmask 588800  }
  0x65   : > { %450 = vrot.lane.b32.xlu1 %v2454_v1, %s2250_s27  ;;  %448 = vrot.lane.b32.xlu0 %v2447_v0, %s2250_s27 }
  0x69   : > { %526 = vrot.lane.b32.xlu1 %v2454_v1, %s2251_s20  ;;  %524 = vrot.lane.b32.xlu0 %v2447_v0, %s2251_s20 }
  0x6d   : > { %522 = vrot.lane.b32.xlu1 %v2461_v2, %s2251_s20  ;;  %446 = vrot.lane.b32.xlu0 %v2461_v2, %s2250_s27 }
  0x71   : > { %368 = vrot.lane.b32.xlu1 %v2480_v3, %s2248_s29  ;;  %291 = vrot.lane.b32.xlu0 %v2480_v3, %s2249_s10 }
  0x75   : > { %604 = vrot.lane.b32.xlu1 %v2487_v4, %s2252_s16  ;;  %602 = vrot.lane.b32.xlu0 %v2454_v1, %s2252_s16 }
  0x79   : > { %382 = vrot.lane.b32.xlu1 %v2494_v5, %s2248_s29  ;;  %305 = vrot.lane.b32.xlu0 %v2494_v5, %s2249_s10 }
  0x7d   : > { %444 = vrot.lane.b32.xlu1 %v2480_v3, %s2250_s27  ;;  %600 = vrot.lane.b32.xlu0 %v2447_v0, %s2252_s16 }
  0x81   : > { %678 = vrot.lane.b32.xlu1 %v2454_v1, %s2253_s17  ;;  %520 = vrot.lane.b32.xlu0 %v2480_v3, %s2251_s20 }
  0x85   : > { %754 = vrot.lane.b32.xlu1 %v2454_v1, %s2254_s8  ;;  %680 = vrot.lane.b32.xlu0 %v2487_v4, %s2253_s17 }
  0x89   : > { %458 = vrot.lane.b32.xlu1 %v2494_v5, %s2250_s27  ;;  %756 = vrot.lane.b32.xlu0 %v2487_v4, %s2254_s8 }
  0x8d   : > { %676 = vrot.lane.b32.xlu1 %v2447_v0, %s2253_s17  ;;  %534 = vrot.lane.b32.xlu0 %v2494_v5, %s2251_s20 }
  0x91   : > { %598 = vrot.lane.b32.xlu1 %v2461_v2, %s2252_s16  ;;  %752 = vrot.lane.b32.xlu0 %v2447_v0, %s2254_s8 }
  0x95   : > { %303 = vrot.lane.b32.xlu1 %v2525_v6, %s2249_s10  ;;  %596 = vrot.lane.b32.xlu0 %v2480_v3, %s2252_s16 }
  0x99   : > { %830 = vrot.lane.b32.xlu1 %v2454_v1, %s2255_s15  ;;  %380 = vrot.lane.b32.xlu0 %v2525_v6, %s2248_s29 }
  0x9d   : > { %301 = vrot.lane.b32.xlu1 %v2536_v7, %s2249_s10  ;;  %832 = vrot.lane.b32.xlu0 %v2487_v4, %s2255_s15 }
  0xa1   : > { %828 = vrot.lane.b32.xlu1 %v2447_v0, %s2255_s15  ;;  %378 = vrot.lane.b32.xlu0 %v2536_v7, %s2248_s29 }
  0xa5   : > { %750 = vrot.lane.b32.xlu1 %v2461_v2, %s2254_s8  ;;  %674 = vrot.lane.b32.xlu0 %v2461_v2, %s2253_s17 }
  0xa9   : > { %748 = vrot.lane.b32.xlu1 %v2480_v3, %s2254_s8  ;;  %672 = vrot.lane.b32.xlu0 %v2480_v3, %s2253_s17 }
  0xad   : > { %532 = vrot.lane.b32.xlu1 %v2525_v6, %s2251_s20  ;;  %456 = vrot.lane.b32.xlu0 %v2525_v6, %s2250_s27 }
  0xb1   : > { %530 = vrot.lane.b32.xlu1 %v2536_v7, %s2251_s20  ;;  %454 = vrot.lane.b32.xlu0 %v2536_v7, %s2250_s27 }
  0xb5   : > { %376 = vrot.lane.b32.xlu1 %v2487_v4, %s2248_s29  ;;  %299 = vrot.lane.b32.xlu0 %v2487_v4, %s2249_s10 }
  0xb9   : > { %826 = vrot.lane.b32.xlu1 %v2461_v2, %s2255_s15  ;;  %610 = vrot.lane.b32.xlu0 %v2494_v5, %s2252_s16 }
  0xbd   : > { %824 = vrot.lane.b32.xlu1 %v2480_v3, %s2255_s15  ;;  %608 = vrot.lane.b32.xlu0 %v2525_v6, %s2252_s16 }
  0xc1   : > { %528 = vrot.lane.b32.xlu1 %v2487_v4, %s2251_s20  ;;  %452 = vrot.lane.b32.xlu0 %v2487_v4, %s2250_s27 }
  0xc5   : > { %762 = vrot.lane.b32.xlu1 %v2494_v5, %s2254_s8  ;;  %686 = vrot.lane.b32.xlu0 %v2494_v5, %s2253_s17 }
  0xc9   : > { %760 = vrot.lane.b32.xlu1 %v2525_v6, %s2254_s8  ;;  %684 = vrot.lane.b32.xlu0 %v2525_v6, %s2253_s17 }
  0xcb   : > { %v373_v15 = vpop.permute.xlu1 %372  ;;  %v296_v16 = vpop.permute.xlu0 %295 }
  0xcd   : > { %838 = vrot.lane.b32.xlu1 %v2494_v5, %s2255_s15  ;;  %606 = vrot.lane.b32.xlu0 %v2536_v7, %s2252_s16 }
  0xcf   : > { %v2616_v20 = vpop.permute.xlu1 %374  ;;  %v2618_v21 = vpop.permute.xlu0 %297 }
  0xd0   : > { %v314_v22 = vsel %vm309_vm1, %v296_v16, %v2618_v21  ;;  %v389_v23 = vsel %vm384_vm0, %v373_v15, %v2616_v20 }
  0xd1   : > { %682 = vrot.lane.b32.xlu1 %v2536_v7, %s2253_s17  ;;  %836 = vrot.lane.b32.xlu0 %v2525_v6, %s2255_s15  ;;  %v363_v25 = vmul.f32 %v2610_v18, %v314_v22  ;;  %v439_v26 = vmul.f32 %v2614_v19, %v389_v23  ;;  %v2713_v23 = vrot.slane %v2704_v62, %v2593_v12 }
  0xd3   : > { %v371_v28 = vpop.permute.xlu1 %370  ;;  %v294_v29 = vpop.permute.xlu0 %293  ;;  %v1924_v30 = vpack.c.bf16 %v439_v26, %v363_v25  ;;  %3871 = vst [vmem:[#allocation11_spill] sm:$0xff] %v2713_v23 }
  0xd4   : > { %v390_v31 = vsel %vm384_vm0, %v371_v28, %v373_v15  ;;  %v315_v32 = vsel %vm309_vm1, %v294_v29, %v296_v16 }
  0xd5   : > { %1925 = vmatprep.subr.bf16.mxu1 %v1924_v30  ;;  %834 = vrot.lane.b32.xlu1 %v2536_v7, %s2255_s15  ;;  %v362_v33 = vmul.f32 %v2628_v24, %v315_v32  ;;  %v438_v34 = vmul.f32 %v2638_v27, %v390_v31  ;;  %v2718_v30 = vsub.s32 0, %v2584_v10 }
  0xd6   : > { %758 = vrot.lane.b32.xlu0 %v2536_v7, %s2254_s8 }
  0xd7   : > { %v2654_v37 = vpop.permute.xlu1 %450  ;;  %v449_v38 = vpop.permute.xlu0 %448  ;;  %v1926_v39 = vpack.c.bf16 %v438_v34, %v362_v33  ;;  %v2728_v34 = vrot.slane %v2595_v13, %v2718_v30 }
  0xd8   : > { %v465_v44 = vsel %vm460_vm2, %v449_v38, %v2654_v37 }
  0xd9   : > { %1927 = vmatpush1.bf16.msra.mxu1 %v1926_v39  ;;  %v515_v49 = vmul.f32 %v2662_v42, %v465_v44  ;;  %3872 = vst [vmem:[#allocation12_spill] sm:$0xff] %v2728_v34 }
  0xda   : > { %904 = vperm.xlu0 %2105, %v901_v41  }
  0xdb   : > { %v2672_v45 = vpop.permute.xlu1 %526  ;;  %v525_v46 = vpop.permute.xlu0 %524 }
  0xdc   : > { %v541_v47 = vsel %vm536_vm3, %v525_v46, %v2672_v45 }
  0xdd   : > { %v591_v50 = vmul.f32 %v2667_v43, %v541_v47  ;;  %v2747_v47 = vrot.slane %v2704_v62, %v2600_v17 }
  0xdf   : > { %v523_v53 = vpop.permute.xlu1 %522  ;;  %v447_v54 = vpop.permute.xlu0 %446  ;;  %v1928_v55 = vpack.c.bf16 %v591_v50, %v515_v49 }
  0xe0   : > { %v542_v56 = vsel %vm536_vm3, %v523_v53, %v525_v46  ;;  %v466_v57 = vsel %vm460_vm2, %v447_v54, %v449_v38  ;;  %v2732_v38 = vrot.slane %v2597_v14, %v2718_v30 }
  0xe1   : > { %v590_v58 = vmul.f32 %v2679_v48, %v542_v56  ;;  %v514_v59 = vmul.f32 %v2685_v51, %v466_v57  ;;  %1929 = vmatprep.subr.bf16.mxu1 %v1928_v55 }
  0xe2   : > { %3873 = vst [vmem:[#allocation13_spill] sm:$0xff] %v2732_v38 }
  0xe3   : > { %v369_v63 = vpop.permute.xlu1 %368  ;;  %v292_v9 = vpop.permute.xlu0 %291  ;;  %v1930_v15 = vpack.c.bf16 %v590_v58, %v514_v59  ;;  %v2755_v58 = vrot.slane %v2650_v35, %v2688_v52 }
  0xe4   : > { %v316_v16 = vsel %vm309_vm1, %v292_v9, %v294_v29  ;;  %v391_v22 = vsel %vm384_vm0, %v369_v63, %v371_v28 }
  0xe5   : > { %1931 = vmatpush1.bf16.msra.mxu1 %v1930_v15  ;;  %v361_v25 = vmul.f32 %v2698_v60, %v316_v16  ;;  %v437_v26 = vmul.f32 %v2702_v61, %v391_v22  ;;  %3874 = vst [vmem:[#allocation14_spill] sm:$0xff] %v2755_v58 }
  0xe7   : > { %v2720_v31 = vpop.permute.xlu1 %604  ;;  %v603_v32 = vpop.permute.xlu0 %602  ;;  %v1908_v33 = vpack.c.bf16 %v437_v26, %v361_v25 }
  0xe8   : > { %v616_v28 = vsel %vm612_vm4, %v603_v32, %v2720_v31 }
  0xe9   : > { %v667_v29 = vmul.f32 %v2713_v23, %v616_v28  ;;  %1909 = vmatprep.subr.bf16.mxu0 %v1908_v33  ;;  %v2769_v33 = vld [vmem:[#allocation2 + $0x30] sm:$0xff]  ;;  %v2771_v28 = vld [vmem:[#allocation2 + $0x38] sm:$0xff] }
  0xeb   : > { %v2734_v39 = vpop.permute.xlu1 %382  ;;  %v2736_v40 = vpop.permute.xlu0 %305  ;;  %v1932_v41 = vpack.c.bf16 %v667_v29, %v2454_v1 }
  0xec   : > { %v392_v44 = vsel %vm384_vm0, %v2734_v39, %v369_v63  ;;  %v317_v46 = vsel %vm309_vm1, %v2736_v40, %v292_v9  ;;  %v2760_v63 = vrot.slane %v2652_v36, %v2688_v52 }
  0xed   : > { %1933 = vmatprep.subr.bf16.mxu1 %v1932_v41  ;;  %v360_v49 = vmul.f32 %v2728_v34, %v317_v46  ;;  %v436_v50 = vmul.f32 %v2732_v38, %v392_v44  ;;  %v2841_v34 = vrot.slane %v2704_v62, %v2718_v30 }
  0xee   : > { %3875 = vst [vmem:[#allocation15_spill] sm:$0xff] %v2760_v63 }
  0xef   : > { %v445_v55 = vpop.permute.xlu1 %444  ;;  %v601_v56 = vpop.permute.xlu0 %600  ;;  %v1910_v1 = vpack.c.bf16 %v436_v50, %v360_v49  ;;  %3883 = vst [vmem:[#allocation23_spill] sm:$0xff] %v2841_v34 }
  0xf0   : > { %v617_v57 = vsel %vm612_vm4, %v601_v56, %v603_v32  ;;  %v467_v9 = vsel %vm460_vm2, %v445_v55, %v447_v54 }
  0xf1   : > { %v666_v59 = vmul.f32 %v2747_v47, %v617_v57  ;;  %1911 = vmatpush1.bf16.msra.mxu0 %v1910_v1  ;;  %v513_v26 = vmul.f32 %v2755_v58, %v467_v9  ;;  %v2798_v57 = vrot.slane %v2650_v35, %v2718_v30  ;;  %v2803_v9 = vrot.slane %v2652_v36, %v2718_v30 }
  0xf3   : > { %v679_v15 = vpop.permute.xlu1 %678  ;;  %v521_v16 = vpop.permute.xlu0 %520  ;;  %v1934_v22 = vpack.c.bf16 %v666_v59, %v2447_v0  ;;  %v2778_v0 = vrot.slane %v2769_v33, %v2593_v12  ;;  %3878 = vst [vmem:[#allocation18_spill] sm:$0xff] %v2798_v57  ;;  %3879 = vst [vmem:[#allocation19_spill] sm:$0xff] %v2803_v9 }
  0xf4   : > { %v543_v25 = vsel %vm536_vm3, %v521_v16, %v523_v53  ;;  %v2783_v53 = vrot.slane %v2771_v28, %v2593_v12 }
  0xf5   : > { %v589_v32 = vmul.f32 %v2760_v63, %v543_v25  ;;  %1935 = vmatpush1.bf16.msra.mxu1 %v1934_v22  ;;  %3876 = vst [vmem:[#allocation16_spill] sm:$0xff] %v2778_v0 }
  0xf6   : > { %3877 = vst [vmem:[#allocation17_spill] sm:$0xff] %v2783_v53 }
  0xf7   : > { %v755_v29 = vpop.permute.xlu1 %754  ;;  %v2774_v54 = vpop.permute.xlu0 %680  ;;  %v1912_v41 = vpack.c.bf16 %v589_v32, %v513_v26 }
  0xf8   : > { %v692_v44 = vsel %vm688_vm5, %v679_v15, %v2774_v54 }
  0xf9   : > { %1913 = vmatprep.subr.bf16.mxu0 %v1912_v41  ;;  %v743_v1 = vmul.f32 %v2778_v0, %v692_v44  ;;  %v2814_v41 = vrot.slane %v2769_v33, %v2600_v17 }
  0xfb   : > { %v2788_v46 = vpop.permute.xlu1 %458  ;;  %v2790_v49 = vpop.permute.xlu0 %756  ;;  %3880 = vst [vmem:[#allocation20_spill] sm:$0xff] %v2814_v41 }
  0xfc   : > { %v768_v50 = vsel %vm764_vm6, %v755_v29, %v2790_v49  ;;  %v468_v22 = vsel %vm460_vm2, %v2788_v46, %v445_v55  ;;  %v2823_v55 = vrot.slane %v2704_v62, %v2688_v52 }
  0xfd   : > { %v819_v59 = vmul.f32 %v2783_v53, %v768_v50  ;;  %v512_v50 = vmul.f32 %v2798_v57, %v468_v22 }
  0xfe   : > { %3881 = vst [vmem:[#allocation21_spill] sm:$0xff] %v2823_v55 }
  0xff   : > { %v2808_v25 = vpop.permute.xlu1 %676  ;;  %v2810_v26 = vpop.permute.xlu0 %534  ;;  %v1936_v32 = vpack.c.bf16 %v819_v59, %v743_v1  ;;  %v2827_v1 = vrot.slane %v2771_v28, %v2600_v17 }
 0x100   : > { %v544_v44 = vsel %vm536_vm3, %v2810_v26, %v521_v16  ;;  %v693_v59 = vsel %vm688_vm5, %v2808_v25, %v679_v15 }
 0x101   : > { %v588_v8 = vmul.f32 %v2803_v9, %v544_v44  ;;  %1937 = vmatprep.subr.bf16.mxu1 %v1936_v32  ;;  %3882 = vst [vmem:[#allocation22_spill] sm:$0xff] %v2827_v1  ;;  %v742_v44 = vmul.f32 %v2814_v41, %v693_v59  ;;  %v2850_v59 = vld [vmem:[#allocation2 + $0x40] sm:$0xff] }
 0x103   : > { %v599_v58 = vpop.permute.xlu1 %598  ;;  %v753_v38 = vpop.permute.xlu0 %752  ;;  %v1914_v16 = vpack.c.bf16 %v588_v8, %v512_v50 }
 0x104   : > { %v618_v22 = vsel %vm612_vm4, %v599_v58, %v601_v56  ;;  %v769_v32 = vsel %vm764_vm6, %v753_v38, %v755_v29 }
 0x105   : > { %v665_v9 = vmul.f32 %v2823_v55, %v618_v22  ;;  %v818_v57 = vmul.f32 %v2827_v1, %v769_v32  ;;  %1915 = vmatpush1.bf16.msra.mxu0 %v1914_v16  ;;  %v2854_v55 = vsub.s32 7, %v2584_v10 }
 0x107   : > { %v304_v15 = vpop.permute.xlu1 %303  ;;  %v2843_v63 = vpop.permute.xlu0 %596  ;;  %v1916_v8 = vpack.c.bf16 %v665_v9, %v2461_v2  ;;  %v1938_v56 = vpack.c.bf16 %v818_v57, %v742_v44  ;;  %v2857_v2 = vsub.s32 6, %v2584_v10  ;;  %v2866_v57 = vrot.slane %v2597_v14, %v2854_v55 }
 0x108   : > { %v619_v29 = vsel %vm612_vm4, %v2843_v63, %v599_v58  ;;  %v2862_v58 = vrot.slane %v2850_v59, %v2593_v12 }
 0x109   : > { %v664_v50 = vmul.f32 %v2841_v34, %v619_v29  ;;  %1917 = vmatprep.subr.bf16.mxu0 %v1916_v8  ;;  %1939 = vmatpush1.bf16.msra.mxu1 %v1938_v56  ;;  %3885 = vst [vmem:[#allocation25_spill] sm:$0xff] %v2866_v57  ;;  %v2877_v8 = vrot.slane %v2595_v13, %v2854_v55 }
 0x10a   : > { %3884 = vst [vmem:[#allocation24_spill] sm:$0xff] %v2862_v58  ;;  %v2881_v12 = vrot.slane %v2595_v13, %v2857_v2 }
 0x10b   : > { %v831_v16 = vpop.permute.xlu1 %830  ;;  %v381_v22 = vpop.permute.xlu0 %380  ;;  %v1918_v32 = vpack.c.bf16 %v664_v50, %v2480_v3  ;;  %3886 = vst [vmem:[#allocation26_spill] sm:$0xff] %v2877_v8  ;;  %v2892_v50 = vrot.slane %v2850_v59, %v2600_v17 }
 0x10c   : > { %v385_v3 = vsel %vm384_vm0, %v381_v22, %v2734_v39  ;;  %3887 = vst [vmem:[#allocation27_spill] sm:$0xff] %v2881_v12  ;;  %v310_v39 = vsel %vm309_vm1, %v304_v15, %v2736_v40 }
 0x10d   : > { %1919 = vmatpush1.bf16.msra.mxu0 %v1918_v32  ;;  %v2896_v32 = vrot.slane %v2597_v14, %v2857_v2  ;;  %v443_v34 = vmul.f32 %v2866_v57, %v385_v3  ;;  %v367_v17 = vmul.f32 %v2877_v8, %v310_v39  ;;  %v2927_v39 = vld [vmem:[%s3801_s2] sm:$0xff] }
 0x10f   : > { %v2871_v9 = vpop.permute.xlu1 %301  ;;  %v2873_v44 = vpop.permute.xlu0 %832  ;;  %3888 = vst [vmem:[#allocation28_spill] sm:$0xff] %v2896_v32 }
 0x110   : > { %v844_v56 = vsel %vm840_vm7, %v831_v16, %v2873_v44  ;;  %v311_v41 = vsel %vm309_vm1, %v2871_v9, %v304_v15  ;;  %v2919_v15 = vrot.slane %v2769_v33, %v2688_v52 }
 0x111   : > { %v895_v29 = vmul.f32 %v2862_v58, %v844_v56  ;;  %v2908_v56 = vrot.slane %v2771_v28, %v2688_v52 }
 0x112   : > { %3889 = vst [vmem:[#allocation29_spill] sm:$0xff] %v2919_v15 }
 0x113   : > { %v2902_v1 = vpop.permute.xlu1 %828  ;;  %998 = vmatprep.subr.mxu1 %v895_v29  ;;  %v2904_v40 = vpop.permute.xlu0 %378  ;;  %v366_v29 = vmul.f32 %v2881_v12, %v311_v41  ;;  %v2977_v12 = vrot.slane %v2652_v36, %v2857_v2 }
 0x114   : > { %v845_v58 = vsel %vm840_vm7, %v2902_v1, %v831_v16  ;;  %v386_v3 = vsel %vm384_vm0, %v2904_v40, %v381_v22  ;;  %v1956_v16 = vpack.c.bf16 %v443_v34, %v367_v17 }
 0x115   : > { %v894_v57 = vmul.f32 %v2892_v50, %v845_v58  ;;  %v442_v0 = vmul.f32 %v2896_v32, %v386_v3  ;;  %v2938_v58 = vrot.slane %v2771_v28, %v2718_v30  ;;  %3895 = vst [vmem:[#allocation34_spill] sm:$0xff] %v2977_v12 }
 0x117   : > { %v1958_v8 = vpack.c.bf16 %v442_v0, %v366_v29  ;;  %v751_v23 = vpop.permute.xlu1 %750  ;;  %999 = vmatpush1.msra.mxu1 %v894_v57  ;;  %v675_v22 = vpop.permute.xlu0 %674  ;;  %3890 = vst [vmem:[#allocation30_spill] sm:$0xff] %v2938_v58  ;;  %v3892_v57 = vmov 0.0  }
 0x118   : > { %v770_v53 = vsel %vm764_vm6, %v751_v23, %v753_v38  ;;  %v694_v41 = vsel %vm688_vm5, %v675_v22, %v2808_v25  ;;  %1957 = vmatprep.subr.bf16.mxu1 %v1956_v16  ;;  %1894 = vmatmul.mubr.msk.f32.vlgmr.msra.gmra.mrb[0].mxu1 %vm907_vm8, %v2927_v39  ;;  %v2944_v38 = vrot.slane %v2769_v33, %v2718_v30 }
 0x119   : > { %v817_v34 = vmul.f32 %v2908_v56, %v770_v53  ;;  %v741_v0 = vmul.f32 %v2919_v15, %v694_v41  ;;  %1959 = vmatpush1.bf16.msra.mxu1 %v1958_v8  ;;  %1188 = vmatprep.mubr.f32.mxu1 %v3892_v57  ;;  %v2961_v41 = vrot.slane %v2652_v36, %v2854_v55 }
 0x11a   : > { %3891 = vst [vmem:[#allocation31_spill] sm:$0xff] %v2944_v38 }
 0x11b   : > { %v2947_v25 = vpop.permute.xlu1 %748  ;;  %v2949_v17 = vpop.permute.xlu0 %672  ;;  %v1920_v3 = vpack.c.bf16 %v817_v34, %v741_v0  ;;  %3893 = vst [vmem:[#allocation32_spill] sm:$0xff] %v2961_v41  ;;  %v2965_v34 = vrot.slane %v2650_v35, %v2854_v55 }
 0x11c   : > { %v771_v29 = vsel %vm764_vm6, %v2947_v25, %v751_v23  ;;  %v695_v53 = vsel %vm688_vm5, %v2949_v17, %v675_v22 }
 0x11d   : > { %v816_v8 = vmul.f32 %v2938_v58, %v771_v29  ;;  %v740_v16 = vmul.f32 %v2944_v38, %v695_v53  ;;  %1921 = vmatprep.subr.bf16.mxu0 %v1920_v3  ;;  %3894 = vst [vmem:[#allocation33_spill] sm:$0xff] %v2965_v34 }
 0x11f   : > { %v533_v0 = vpop.permute.xlu1 %532  ;;  %v457_v32 = vpop.permute.xlu0 %456  ;;  %v1922_v23 = vpack.c.bf16 %v816_v8, %v740_v16  ;;  %v2981_v8 = vrot.slane %v2650_v35, %v2857_v2 }
 0x120   : > { %v537_v22 = vsel %vm536_vm3, %v533_v0, %v2810_v26  ;;  %v461_v29 = vsel %vm460_vm2, %v457_v32, %v2788_v46 }
 0x121   : > { %v595_v3 = vmul.f32 %v2961_v41, %v537_v22  ;;  %v519_v53 = vmul.f32 %v2965_v34, %v461_v29  ;;  %1923 = vmatpush1.bf16.msra.mxu0 %v1922_v23  ;;  %3896 = vst [vmem:[#allocation35_spill] sm:$0xff] %v2981_v8  ;;  %v2990_v29 = vsub.s32 4, %v2584_v10  ;;  %v2993_v34 = vsub.s32 5, %v2584_v10 }
 0x123   : > { %v531_v16 = vpop.permute.xlu1 %530  ;;  %v455_v38 = vpop.permute.xlu0 %454  ;;  %v1960_v26 = vpack.c.bf16 %v595_v3, %v519_v53  ;;  %v3009_v10 = vrot.slane %v2597_v14, %v2993_v34  ;;  %v3019_v53 = vrot.slane %v2595_v13, %v2990_v29 }
 0x124   : > { %v538_v58 = vsel %vm536_vm3, %v531_v16, %v533_v0  ;;  %v462_v46 = vsel %vm460_vm2, %v455_v38, %v457_v32  ;;  %v2997_v0 = vrot.slane %v2850_v59, %v2688_v52  ;;  %v3001_v32 = vrot.slane %v2704_v62, %v2854_v55 }
 0x125   : > { %v594_v22 = vmul.f32 %v2977_v12, %v538_v58  ;;  %v518_v23 = vmul.f32 %v2981_v8, %v462_v46  ;;  %1961 = vmatprep.subr.bf16.mxu1 %v1960_v26  ;;  %v3005_v58 = vrot.slane %v2597_v14, %v2990_v29  ;;  %v3023_v26 = vrot.slane %v2595_v13, %v2993_v34 }
 0x126   : > { %3897 = vst [vmem:[#allocation36_spill] sm:$0xff] %v3001_v32  ;;  %v3041_v8 = vrot.slane %v2850_v59, %v2718_v30 }
 0x127   : > { %v1962_v41 = vpack.c.bf16 %v594_v22, %v518_v23  ;;  %v377_v15 = vpop.permute.xlu1 %376  ;;  %v300_v3 = vpop.permute.xlu0 %299 }
 0x128   : > { %v388_v52 = vsel %vm384_vm0, %v2616_v20, %v377_v15  ;;  %v312_v14 = vsel %vm309_vm1, %v300_v3, %v2871_v9  ;;  %v3045_v9 = vrot.slane %v2704_v62, %v2857_v2 }
 0x129   : > { %1963 = vmatpush1.bf16.msra.mxu1 %v1962_v41  ;;  %v387_v41 = vsel %vm384_vm0, %v377_v15, %v2904_v40  ;;  %v313_v40 = vsel %vm309_vm1, %v2618_v21, %v300_v3  ;;  %v440_v21 = vmul.f32 %v3005_v58, %v388_v52  ;;  %v3058_v52 = vrot.slane %v2652_v36, %v2990_v29 }
 0x12a   : > { %3898 = vst [vmem:[#allocation37_spill] sm:$0xff] %v3045_v9  ;;  %v364_v3 = vmul.f32 %v3019_v53, %v313_v40 }
 0x12b   : > { %v827_v46 = vpop.permute.xlu1 %826  ;;  %v611_v22 = vpop.permute.xlu0 %610 }
 0x12c   : > { %v846_v20 = vsel %vm840_vm7, %v827_v46, %v2902_v1  ;;  %v620_v15 = vsel %vm612_vm4, %v611_v22, %v2843_v63  ;;  %v441_v1 = vmul.f32 %v3009_v10, %v387_v41  ;;  %v365_v63 = vmul.f32 %v3023_v26, %v312_v14 }
 0x12d   : > { %v893_v13 = vmul.f32 %v2997_v0, %v846_v20  ;;  %v671_v23 = vmul.f32 %v3001_v32, %v620_v15  ;;  %v3062_v41 = vrot.slane %v2652_v36, %v2993_v34 }
 0x12f   : > { %v825_v12 = vpop.permute.xlu1 %824  ;;  %927 = vmatprep.subr.mxu0 %v893_v13  ;;  %v609_v20 = vpop.permute.xlu0 %608  ;;  %v1964_v15 = vpack.c.bf16 %v671_v23, %v2494_v5  ;;  %v3068_v5 = vrot.slane %v2650_v35, %v2990_v29  ;;  %v1942_v13 = vpack.c.bf16 %v440_v21, %v364_v3 }
 0x130   : > { %v847_v30 = vsel %vm840_vm7, %v825_v12, %v827_v46  ;;  %v613_v32 = vsel %vm612_vm4, %v609_v20, %v611_v22  ;;  %v3072_v46 = vrot.slane %v2650_v35, %v2993_v34  ;;  %v3076_v22 = vrot.slane %v2771_v28, %v2854_v55 }
 0x131   : > { %v892_v14 = vmul.f32 %v3041_v8, %v847_v30  ;;  %v670_v40 = vmul.f32 %v3045_v9, %v613_v32  ;;  %1965 = vmatprep.subr.bf16.mxu1 %v1964_v15  ;;  %v1940_v32 = vpack.c.bf16 %v441_v1, %v365_v63  ;;  %v3081_v15 = vrot.slane %v2769_v33, %v2854_v55 }
 0x132   : > { %3899 = vst [vmem:[#allocation38_spill] sm:$0xff] %v3076_v22 }
 0x133   : > { %v1966_v36 = vpack.c.bf16 %v670_v40, %v2525_v6  ;;  %v529_v23 = vpop.permute.xlu1 %528  ;;  %928 = vmatpush1.msra.mxu0 %v892_v14  ;;  %v453_v30 = vpop.permute.xlu0 %452  ;;  %3900 = vst [vmem:[#allocation39_spill] sm:$0xff] %v3081_v15 }
 0x134   : > { %v539_v9 = vsel %vm536_vm3, %v529_v23, %v531_v16  ;;  %v540_v35 = vsel %vm536_vm3, %v2672_v45, %v529_v23  ;;  %v463_v21 = vsel %vm460_vm2, %v453_v30, %v455_v38  ;;  %v464_v6 = vsel %vm460_vm2, %v2654_v37, %v453_v30  ;;  %1893 = vmatmul.mubr.msk.f32.vlgmr.msra.gmra.mrb[0].mxu0 %vm907_vm8, %v2927_v39 }
 0x135   : > { %v592_v1 = vmul.f32 %v3058_v52, %v540_v35  ;;  %v593_v3 = vmul.f32 %v3062_v41, %v539_v9  ;;  %v516_v16 = vmul.f32 %v3068_v5, %v464_v6  ;;  %v517_v63 = vmul.f32 %v3072_v46, %v463_v21  ;;  %1941 = vmatprep.subr.bf16.mxu0 %v1940_v32 }
 0x136   : > { %1943 = vmatpush1.bf16.msra.mxu0 %v1942_v13  ;;  %1967 = vmatpush1.bf16.msra.mxu1 %v1966_v36  ;;  %v3110_v13 = vrot.slane %v2771_v28, %v2857_v2  ;;  %v3114_v36 = vrot.slane %v2769_v33, %v2857_v2  ;;  %v3122_v6 = vrot.slane %v2850_v59, %v2854_v55 }
 0x137   : > { %v1946_v45 = vpack.c.bf16 %v592_v1, %v516_v16  ;;  %v763_v38 = vpop.permute.xlu1 %762  ;;  %v687_v14 = vpop.permute.xlu0 %686  ;;  %v1944_v40 = vpack.c.bf16 %v593_v3, %v517_v63  ;;  %1117 = vmatprep.mubr.f32.mxu0 %v3892_v57  ;;  %v3128_v16 = vrot.slane %v2704_v62, %v2990_v29  ;;  %v3132_v63 = vrot.slane %v2704_v62, %v2993_v34 }
 0x138   : > { %v772_v37 = vsel %vm764_vm6, %v763_v38, %v2947_v25  ;;  %v696_v9 = vsel %vm688_vm5, %v687_v14, %v2949_v17  ;;  %3901 = vst [vmem:[#allocation40_spill] sm:$0xff] %v3110_v13  ;;  %3902 = vst [vmem:[#allocation41_spill] sm:$0xff] %v3114_v36 }
 0x139   : > { %v823_v23 = vmul.f32 %v3076_v22, %v772_v37  ;;  %v747_v30 = vmul.f32 %v3081_v15, %v696_v9  ;;  %1945 = vmatprep.subr.bf16.mxu0 %v1944_v40  ;;  %3903 = vst [vmem:[#allocation42_spill] sm:$0xff] %v3122_v6  ;;  %3904 = vst [vmem:[#allocation43_spill] sm:$0xff] %v3128_v16 }
 0x13a   : > { %1947 = vmatpush1.bf16.msra.mxu0 %v1946_v45  ;;  %3905 = vst [vmem:[#allocation44_spill] sm:$0xff] %v3132_v63 }
 0x13b   : > { %v761_v32 = vpop.permute.xlu1 %760  ;;  %v685_v25 = vpop.permute.xlu0 %684  ;;  %v1968_v35 = vpack.c.bf16 %v823_v23, %v747_v30  ;;  %v3146_v30 = vrot.slane %v2850_v59, %v2857_v2 }
 0x13c   : > { %v765_v17 = vsel %vm764_vm6, %v761_v32, %v763_v38  ;;  %v689_v21 = vsel %vm688_vm5, %v685_v25, %v687_v14 }
 0x13d   : > { %v822_v1 = vmul.f32 %v3110_v13, %v765_v17  ;;  %v746_v3 = vmul.f32 %v3114_v36, %v689_v21  ;;  %1969 = vmatprep.subr.bf16.mxu1 %v1968_v35  ;;  %3906 = vst [vmem:[#allocation45_spill] sm:$0xff] %v3146_v30 }
 0x13f   : > { %v1970_v45 = vpack.c.bf16 %v822_v1, %v746_v3  ;;  %v839_v38 = vpop.permute.xlu1 %838  ;;  %v607_v14 = vpop.permute.xlu0 %606  ;;  %v3169_v3 = vrot.slane %v2771_v28, %v2993_v34 }
 0x140   : > { %v848_v55 = vsel %vm840_vm7, %v839_v38, %v825_v12  ;;  %v614_v40 = vsel %vm612_vm4, %v607_v14, %v609_v20  ;;  %v615_v37 = vsel %vm612_vm4, %v2720_v31, %v607_v14  ;;  %v3152_v31 = vrot.slane %v2769_v33, %v2993_v34 }
 0x141   : > { %v899_v9 = vmul.f32 %v3122_v6, %v848_v55  ;;  %v668_v23 = vmul.f32 %v3128_v16, %v615_v37  ;;  %v669_v62 = vmul.f32 %v3132_v63, %v614_v40  ;;  %1971 = vmatpush1.bf16.msra.mxu1 %v1970_v45  ;;  %3910 = vst [vmem:[#allocation49_spill] sm:$0xff] %v3169_v3 }
 0x142   : > { %3907 = vst [vmem:[#allocation46_spill] sm:$0xff] %v3152_v31 }
 0x143   : > { %v1950_v12 = vpack.c.bf16 %v668_v23, %v2487_v4  ;;  %v683_v35 = vpop.permute.xlu1 %682  ;;  %1140 = vmatprep.subr.mxu1 %v899_v9  ;;  %v837_v20 = vpop.permute.xlu0 %836  ;;  %v1948_v17 = vpack.c.bf16 %v669_v62, %v2536_v7  ;;  %v3161_v4 = vrot.slane %v2769_v33, %v2990_v29  ;;  %v3165_v7 = vrot.slane %v2771_v28, %v2990_v29 }
 0x144   : > { %v841_v21 = vsel %vm840_vm7, %v837_v20, %v839_v38  ;;  %v690_v1 = vsel %vm688_vm5, %v683_v35, %v685_v25  ;;  %v691_v25 = vsel %vm688_vm5, %v2774_v54, %v683_v35  ;;  %v3177_v33 = vrot.slane %v2850_v59, %v2993_v34 }
 0x145   : > { %v898_v2 = vmul.f32 %v3146_v30, %v841_v21  ;;  %1949 = vmatprep.subr.bf16.mxu0 %v1948_v17  ;;  %3908 = vst [vmem:[#allocation47_spill] sm:$0xff] %v3161_v4  ;;  %3909 = vst [vmem:[#allocation48_spill] sm:$0xff] %v3165_v7  ;;  %v745_v45 = vmul.f32 %v3152_v31, %v690_v1  ;;  %v744_v34 = vmul.f32 %v3161_v4, %v691_v25  ;;  %v3921_v31 = vld [vmem:[#allocation11_spill] sm:$0xff] }
 0x146   : > { %1951 = vmatpush1.bf16.msra.mxu0 %v1950_v12  ;;  %3911 = vst [vmem:[#allocation50_spill] sm:$0xff] %v3177_v33  ;;  %v3195_v12 = vrot.slane %v2850_v59, %v2990_v29 }
 0x147   : > { %1141 = vmatpush1.msra.mxu1 %v898_v2  ;;  %v835_v38 = vpop.permute.xlu1 %834 }
 0x148   : > { %v759_v14 = vpop.permute.xlu0 %758  ;;  %1896 = vmatmul.mubr.msk.f32.vlgmr.msra.gmra.mrb[2].mxu1 %vm907_vm8, %v2927_v39  ;;  %v842_v28 = vsel %vm840_vm7, %v835_v38, %v837_v20  ;;  %3912 = vst [vmem:[#allocation51_spill] sm:$0xff] %v3195_v12 }
 0x149   : > { %v766_v55 = vsel %vm764_vm6, %v759_v14, %v761_v32  ;;  %v767_v54 = vsel %vm764_vm6, %v2790_v49, %v759_v14  ;;  %1604 = vmatprep.mubr.f32.mxu1 %v3892_v57  ;;  %v897_v9 = vmul.f32 %v3177_v33, %v842_v28  ;;  %v843_v49 = vsel %vm840_vm7, %v2873_v44, %v835_v38 }
 0x14a   : > { %v820_v40 = vmul.f32 %v3165_v7, %v767_v54  ;;  %v821_v37 = vmul.f32 %v3169_v3, %v766_v55  ;;  %v896_v32 = vmul.f32 %v3195_v12, %v843_v49 }
 0x14c   : > { %v1954_v23 = vpack.c.bf16 %v820_v40, %v744_v34  ;;  %v1952_v62 = vpack.c.bf16 %v821_v37, %v745_v45 }
 0x14e   : > { %1953 = vmatprep.subr.bf16.mxu0 %v1952_v62 }
 0x14f   : > { %1955 = vmatpush1.bf16.msra.mxu0 %v1954_v23 }
 0x150   : > { %1069 = vmatprep.subr.mxu0 %v897_v9 }
 0x153   : > { %1070 = vmatpush1.msra.mxu0 %v896_v32 }
 0x154   : > { %1895 = vmatmul.mubr.msk.f32.vlgmr.msra.gmra.mrb[2].mxu0 %vm907_vm8, %v2927_v39 }
 0x155   : > { %1533 = vmatprep.mubr.f32.mxu0 %v3892_v57 }
 0x159   : > { %v3204_v35 = vpop.permute.xlu0 %904 }
 0x1eb   : > { %v1048_v20 = vpop.f32.mrb[0].mxu1 }
 0x1ec   : > { %v1049_v59 = vadd.f32 %v1048_v20, %v3204_v35  ;;  %v1050_v29 = vpop.f32.mrb[1].mxu1 }
 0x1ed   : > { %v1051_v25 = vadd.f32 %v1050_v29, %v3204_v35  ;;  %v1460_v29 = vld [vmem:[%s3804_s5] sm:$0xff] }
 0x1ee   : > { %v3207_v17 = vmax.f32 %v1049_v59, 0.0 }
 0x1ef   : > { %v3238_v28 = vmax.f32 %v1051_v25, 0.0 }
 0x1f0   : > { %1207 = vrot.lane.b32.xlu0 %v3207_v17, %s2249_s10 }
 0x207   : > { %v977_v44 = vpop.f32.mrb[0].mxu0 }
 0x208   : > { %v978_v21 = vadd.f32 %v977_v44, %v3204_v35  ;;  %v979_v1 = vpop.f32.mrb[1].mxu0 }
 0x209   : > { %v980_v39 = vadd.f32 %v979_v1, %v3204_v35 }
 0x20a   : > { %v3212_v2 = vmax.f32 %v978_v21, 0.0 }
 0x20b   : > { %v3232_v45 = vmax.f32 %v980_v39, 0.0 }
 0x20c   : > { %1235 = vrot.lane.b32.xlu0 %v3212_v2, %s2248_s29  ;;  %1203 = vrot.lane.b32.xlu1 %v3212_v2, %s2249_s10 }
 0x210   : > { %1239 = vrot.lane.b32.xlu0 %v3207_v17, %s2248_s29  ;;  %1335 = vrot.lane.b32.xlu1 %v3207_v17, %s2252_s16 }
 0x214   : > { %1267 = vrot.lane.b32.xlu0 %v3212_v2, %s2250_s27  ;;  %1363 = vrot.lane.b32.xlu1 %v3212_v2, %s2253_s17 }
 0x218   : > { %1271 = vrot.lane.b32.xlu0 %v3207_v17, %s2250_s27  ;;  %1427 = vrot.lane.b32.xlu1 %v3212_v2, %s2255_s15 }
 0x21b   : > { %v1190_v38 = vpop.f32.mrb[2].mxu1 }
 0x21c   : > { %v1192_v14 = vpop.f32.mrb[3].mxu1  ;;  %1299 = vrot.lane.b32.xlu0 %v3212_v2, %s2251_s20  ;;  %1205 = vrot.lane.b32.xlu1 %v3232_v45, %s2249_s10  ;;  %v1191_v37 = vadd.f32 %v1190_v38, %v3204_v35 }
 0x21d   : > { %v1193_v23 = vadd.f32 %v1192_v14, %v3204_v35 }
 0x21e   : > { %v3288_v9 = vmax.f32 %v1191_v37, 0.0 }
 0x21f   : > { %v3307_v62 = vmax.f32 %v1193_v23, 0.0 }
 0x220   : > { %1303 = vrot.lane.b32.xlu0 %v3207_v17, %s2251_s20  ;;  %1209 = vrot.lane.b32.xlu1 %v3238_v28, %s2249_s10  ;;  %3914 = vst [vmem:[#allocation53_spill] sm:$0xff] %v3288_v9 }
 0x221   : > { %3915 = vst [vmem:[#allocation54_spill] sm:$0xff] %v3307_v62 }
 0x224   : > { %1331 = vrot.lane.b32.xlu0 %v3212_v2, %s2252_s16  ;;  %1237 = vrot.lane.b32.xlu1 %v3232_v45, %s2248_s29 }
 0x227   : > { %v1119_v55 = vpop.f32.mrb[2].mxu0 }
 0x228   : > { %v1121_v54 = vpop.f32.mrb[3].mxu0  ;;  %1367 = vrot.lane.b32.xlu0 %v3207_v17, %s2253_s17  ;;  %1241 = vrot.lane.b32.xlu1 %v3238_v28, %s2248_s29  ;;  %v1120_v34 = vadd.f32 %v1119_v55, %v3204_v35 }
 0x229   : > { %v1122_v49 = vadd.f32 %v1121_v54, %v3204_v35 }
 0x22a   : > { %v3273_v40 = vmax.f32 %v1120_v34, 0.0 }
 0x22b   : > { %v3322_v32 = vmax.f32 %v1122_v49, 0.0 }
 0x22c   : > { %1399 = vrot.lane.b32.xlu0 %v3207_v17, %s2254_s8  ;;  %1269 = vrot.lane.b32.xlu1 %v3232_v45, %s2250_s27  ;;  %3913 = vst [vmem:[#allocation52_spill] sm:$0xff] %v3273_v40 }
 0x22d   : > { %3916 = vst [vmem:[#allocation55_spill] sm:$0xff] %v3322_v32 }
 0x230   : > { %1395 = vrot.lane.b32.xlu0 %v3212_v2, %s2254_s8  ;;  %1273 = vrot.lane.b32.xlu1 %v3238_v28, %s2250_s27 }
 0x234   : > { %1431 = vrot.lane.b32.xlu0 %v3207_v17, %s2255_s15  ;;  %1301 = vrot.lane.b32.xlu1 %v3232_v45, %s2251_s20 }
 0x238   : > { %1333 = vrot.lane.b32.xlu0 %v3232_v45, %s2252_s16  ;;  %1305 = vrot.lane.b32.xlu1 %v3238_v28, %s2251_s20 }
 0x23c   : > { %1337 = vrot.lane.b32.xlu0 %v3238_v28, %s2252_s16  ;;  %1365 = vrot.lane.b32.xlu1 %v3232_v45, %s2253_s17 }
 0x240   : > { %1371 = vrot.lane.b32.xlu0 %v3273_v40, %s2253_s17  ;;  %1369 = vrot.lane.b32.xlu1 %v3238_v28, %s2253_s17 }
 0x244   : > { %1403 = vrot.lane.b32.xlu0 %v3273_v40, %s2254_s8  ;;  %1397 = vrot.lane.b32.xlu1 %v3232_v45, %s2254_s8 }
 0x248   : > { %1243 = vrot.lane.b32.xlu0 %v3273_v40, %s2248_s29  ;;  %1401 = vrot.lane.b32.xlu1 %v3238_v28, %s2254_s8 }
 0x24c   : > { %1247 = vrot.lane.b32.xlu0 %v3288_v9, %s2248_s29  ;;  %1429 = vrot.lane.b32.xlu1 %v3232_v45, %s2255_s15 }
 0x250   : > { %1435 = vrot.lane.b32.xlu0 %v3273_v40, %s2255_s15  ;;  %1433 = vrot.lane.b32.xlu1 %v3238_v28, %s2255_s15 }
 0x254   : > { %1275 = vrot.lane.b32.xlu0 %v3273_v40, %s2250_s27  ;;  %1339 = vrot.lane.b32.xlu1 %v3273_v40, %s2252_s16 }
 0x258   : > { %1279 = vrot.lane.b32.xlu0 %v3288_v9, %s2250_s27  ;;  %1211 = vrot.lane.b32.xlu1 %v3273_v40, %s2249_s10 }
 0x25c   : > { %1217 = vrot.lane.b32.xlu0 %v3307_v62, %s2249_s10  ;;  %1215 = vrot.lane.b32.xlu1 %v3288_v9, %s2249_s10 }
 0x260   : > { %1281 = vrot.lane.b32.xlu0 %v3307_v62, %s2250_s27  ;;  %1307 = vrot.lane.b32.xlu1 %v3273_v40, %s2251_s20 }
 0x262   : > { %v1208_v35 = vpop.permute.xlu0 %1207 }
 0x264   : > { %1375 = vrot.lane.b32.xlu0 %v3288_v9, %s2253_s17  ;;  %1311 = vrot.lane.b32.xlu1 %v3288_v9, %s2251_s20 }
 0x268   : > { %1213 = vrot.lane.b32.xlu0 %v3322_v32, %s2249_s10  ;;  %1249 = vrot.lane.b32.xlu1 %v3307_v62, %s2248_s29 }
 0x26c   : > { %1309 = vrot.lane.b32.xlu0 %v3322_v32, %s2251_s20  ;;  %1313 = vrot.lane.b32.xlu1 %v3307_v62, %s2251_s20 }
 0x270   : > { %1341 = vrot.lane.b32.xlu0 %v3322_v32, %s2252_s16  ;;  %1343 = vrot.lane.b32.xlu1 %v3288_v9, %s2252_s16 }
 0x274   : > { %1345 = vrot.lane.b32.xlu0 %v3307_v62, %s2252_s16  ;;  %1407 = vrot.lane.b32.xlu1 %v3288_v9, %s2254_s8  ;;  %s3734_s16 = scalar_lea.vmem [#allocation7], %s1891_s11  ;;  %s1907_s11 = sshll.u32 %s2315_s25, 10 }
 0x275   : > { %s3751_s18 = scalar_lea.hbm %s3805_s6, %s1907_s11  ;;  %s1786_s25 = scalar_lea.sflag [#allocation4], %s2434_s26 }
 0x278   : > { %1405 = vrot.lane.b32.xlu0 %v3322_v32, %s2254_s8  ;;  %1245 = vrot.lane.b32.xlu1 %v3322_v32, %s2248_s29 }
 0x27c   : > { %1409 = vrot.lane.b32.xlu0 %v3307_v62, %s2254_s8  ;;  %1277 = vrot.lane.b32.xlu1 %v3322_v32, %s2250_s27 }
 0x27e   : > { %v3348_v20 = vpop.permute.xlu0 %1235  ;;  %v3350_v59 = vpop.permute.xlu1 %1203 }
 0x280   : > { %1439 = vrot.lane.b32.xlu0 %v3288_v9, %s2255_s15  ;;  %1373 = vrot.lane.b32.xlu1 %v3322_v32, %s2253_s17 }
 0x282   : > { %v1240_v44 = vpop.permute.xlu0 %1239  ;;  %v3359_v21 = vpop.permute.xlu1 %1335 }
 0x284   : > { %1463 = vperm.xlu0 %2105, %v1460_v29   ;;  %1377 = vrot.lane.b32.xlu1 %v3307_v62, %s2253_s17  ;;  %s1800_s17 = sshll.u32 %s3734_s16, 4  ;;  %s3753_s17 = int_to_ptr.vmem [resolvable:$true] %s1800_s17 }
 0x285   : > { %p2179_p10 = scmp.lt.s32.totalorder %s3753_s17, %s2177_s30 }
 0x286   : > { %v3363_v1 = vpop.permute.xlu0 %1267  ;;  %v3365_v39 = vpop.permute.xlu1 %1363 }
 0x288   : > { %1437 = vrot.lane.b32.xlu1 %v3322_v32, %s2255_s15  ;;  %v3920_v32 = vld [vmem:[#allocation17_spill] sm:$0xff] }
 0x28a   : > { %v1272_v25 = vpop.permute.xlu0 %1271  ;;  %v3369_v38 = vpop.permute.xlu1 %1427 }
 0x28c   : > { %1441 = vrot.lane.b32.xlu1 %v3307_v62, %s2255_s15 }
 0x28e   : > { %v3373_v14 = vpop.permute.xlu0 %1299  ;;  %v1206_v55 = vpop.permute.xlu1 %1205 }
 0x28f   : > { %v1225_v37 = vsel %vm309_vm1, %v3350_v59, %v1206_v55  ;;  %v1224_v7 = vsel %vm309_vm1, %v1206_v55, %v1208_v35 }
 0x290   : > { %v1228_v12 = vmul.f32 %v1225_v37, %v2698_v60 }
 0x292   : > { %v1304_v54 = vpop.permute.xlu0 %1303  ;;  %v3375_v34 = vpop.permute.xlu1 %1209 }
 0x293   : > { %v1223_v33 = vsel %vm309_vm1, %v1208_v35, %v3375_v34 }
 0x294   : > { %v1230_v37 = vmul.f32 %v1223_v33, %v2610_v18 }
 0x296   : > { %v3380_v23 = vpop.permute.xlu0 %1331  ;;  %v1238_v49 = vpop.permute.xlu1 %1237 }
 0x297   : > { %v1257_v29 = vsel %vm384_vm0, %v3348_v20, %v1238_v49  ;;  %v1256_v6 = vsel %vm384_vm0, %v1238_v49, %v1240_v44  ;;  %v1229_v49 = vmul.f32 %v1224_v7, %v2628_v24 }
 0x298   : > { %v1260_v30 = vmul.f32 %v1257_v29, %v2702_v61  ;;  %v1261_v36 = vmul.f32 %v1256_v6, %v2638_v27 }
 0x29a   : > { %v3394_v4 = vpop.permute.xlu0 %1367  ;;  %v1242_v40 = vpop.permute.xlu1 %1241  ;;  %v1972_v15 = vpack.c.bf16 %v1260_v30, %v1228_v12  ;;  %v1990_v55 = vpack.c.bf16 %v1261_v36, %v1229_v49 }
 0x29b   : > { %v1255_v60 = vsel %vm384_vm0, %v1240_v44, %v1242_v40 }
 0x29c   : > { %v1262_v61 = vmul.f32 %v1255_v60, %v2614_v19  ;;  %1973 = vmatprep.subr.bf16.mxu0 %v1972_v15 }
 0x29e   : > { %v3402_v29 = vpop.permute.xlu0 %1399  ;;  %v3404_v22 = vpop.permute.xlu1 %1269  ;;  %v1988_v35 = vpack.c.bf16 %v1262_v61, %v1230_v37 }
 0x29f   : > { %v1288_v15 = vsel %vm460_vm2, %v3404_v22, %v1272_v25 }
 0x2a0   : > { %1989 = vmatprep.subr.bf16.mxu1 %v1988_v35  ;;  %v1293_v37 = vmul.f32 %v1288_v15, %v2685_v51 }
 0x2a1   : > { %1991 = vmatpush1.bf16.msra.mxu1 %v1990_v55 }
 0x2a2   : > { %v3406_v30 = vpop.permute.xlu0 %1395  ;;  %v3408_v27 = vpop.permute.xlu1 %1273 }
 0x2a3   : > { %v1287_v24 = vsel %vm460_vm2, %v1272_v25, %v3408_v27 }
 0x2a4   : > { %v1294_v44 = vmul.f32 %v1287_v24, %v2662_v42 }
 0x2a6   : > { %v3410_v6 = vpop.permute.xlu0 %1431  ;;  %v3412_v18 = vpop.permute.xlu1 %1301 }
 0x2a7   : > { %v1320_v19 = vsel %vm536_vm3, %v3412_v18, %v1304_v54 }
 0x2a8   : > { %v1325_v33 = vmul.f32 %v1320_v19, %v2679_v48 }
 0x2aa   : > { %v3423_v36 = vpop.permute.xlu0 %1333  ;;  %v1306_v7 = vpop.permute.xlu1 %1305  ;;  %v1994_v55 = vpack.c.bf16 %v1325_v33, %v1293_v37 }
 0x2ab   : > { %v1319_v12 = vsel %vm536_vm3, %v1304_v54, %v1306_v7 }
 0x2ac   : > { %v1326_v60 = vmul.f32 %v1319_v12, %v2667_v43 }
 0x2ae   : > { %v1338_v61 = vpop.permute.xlu0 %1337  ;;  %v3431_v49 = vpop.permute.xlu1 %1365  ;;  %v1992_v35 = vpack.c.bf16 %v1326_v60, %v1294_v44 }
 0x2af   : > { %v1351_v33 = vsel %vm612_vm4, %v3359_v21, %v1338_v61 }
 0x2b0   : > { %1993 = vmatprep.subr.bf16.mxu1 %v1992_v35  ;;  %v1357_v37 = vmul.f32 %v1351_v33, %v2747_v47 }
 0x2b1   : > { %1995 = vmatpush1.bf16.msra.mxu1 %v1994_v55 }
 0x2b2   : > { %v3433_v25 = vpop.permute.xlu0 %1371  ;;  %v1370_v13 = vpop.permute.xlu1 %1369 }
 0x2b3   : > { %3917 = vst [vmem:[#allocation56_spill] sm:$0xff] %v3433_v25  ;;  %v1382_v35 = vsel %vm688_vm5, %v1370_v13, %v3433_v25  ;;  %v1383_v33 = vsel %vm688_vm5, %v3394_v4, %v1370_v13  ;;  %v3922_v25 = vld [vmem:[#allocation16_spill] sm:$0xff] }
 0x2b4   : > { %v1390_v16 = vmul.f32 %v1382_v35, %v3922_v25  ;;  %v3924_v35 = vld [vmem:[#allocation20_spill] sm:$0xff] }
 0x2b5   : > { %v1389_v63 = vmul.f32 %v1383_v33, %v3924_v35  ;;  %v3927_v35 = vld [vmem:[#allocation15_spill] sm:$0xff] }
 0x2b6   : > { %v3435_v48 = vpop.permute.xlu0 %1403  ;;  %v3437_v19 = vpop.permute.xlu1 %1397 }
 0x2b7   : > { %3918 = vst [vmem:[#allocation57_spill] sm:$0xff] %v3435_v48 }
 0x2ba   : > { %v3439_v54 = vpop.permute.xlu0 %1243  ;;  %v1402_v42 = vpop.permute.xlu1 %1401 }
 0x2bb   : > { %v1414_v12 = vsel %vm764_vm6, %v1402_v42, %v3435_v48  ;;  %v1415_v3 = vsel %vm764_vm6, %v3402_v29, %v1402_v42  ;;  %v1254_v47 = vsel %vm384_vm0, %v1242_v40, %v3439_v54 }
 0x2bc   : > { %v1422_v48 = vmul.f32 %v1414_v12, %v3920_v32  ;;  %v1998_v32 = vpack.c.bf16 %v1357_v37, %v3207_v17  ;;  %v3923_v12 = vld [vmem:[#allocation22_spill] sm:$0xff] }
 0x2be   : > { %v3441_v43 = vpop.permute.xlu0 %1247  ;;  %v3443_v51 = vpop.permute.xlu1 %1429  ;;  %v2000_v25 = vpack.c.bf16 %v1422_v48, %v1390_v16  ;;  %v3925_v16 = vld [vmem:[#allocation24_spill] sm:$0xff] }
 0x2c2   : > { %v3445_v24 = vpop.permute.xlu0 %1435  ;;  %v1434_v15 = vpop.permute.xlu1 %1433 }
 0x2c3   : > { %3919 = vst [vmem:[#allocation58_spill] sm:$0xff] %v3445_v24  ;;  %v1446_v17 = vsel %vm840_vm7, %v1434_v15, %v3445_v24 }
 0x2c6   : > { %v3453_v44 = vpop.permute.xlu0 %1275  ;;  %v3455_v60 = vpop.permute.xlu1 %1339 }
 0x2c7   : > { %v1350_v55 = vsel %vm612_vm4, %v1338_v61, %v3455_v60  ;;  %v1286_v48 = vsel %vm460_vm2, %v3408_v27, %v3453_v44 }
 0x2c8   : > { %v1358_v9 = vmul.f32 %v1350_v55, %v3921_v31  ;;  %v1421_v31 = vmul.f32 %v1415_v3, %v3923_v12  ;;  %v3488_v55 = vmul.f32 %v1254_v47, %v3005_v58 }
 0x2ca   : > { %v3476_v62 = vpop.permute.xlu0 %1279  ;;  %v3478_v61 = vpop.permute.xlu1 %1211  ;;  %v1996_v42 = vpack.c.bf16 %v1358_v9, %v3238_v28  ;;  %v2002_v58 = vpack.c.bf16 %v1421_v31, %v1389_v63  ;;  %v1289_v31 = vsel %vm460_vm2, %v3363_v1, %v3404_v22  ;;  %v3929_v22 = vld [vmem:[#allocation26_spill] sm:$0xff] }
 0x2cb   : > { %v1222_v40 = vsel %vm309_vm1, %v3375_v34, %v3478_v61  ;;  %v1454_v34 = vmul.f32 %v1446_v17, %v3925_v16 }
 0x2cc   : > { %v3491_v13 = vmul.f32 %v1222_v40, %v3019_v53  ;;  %1997 = vmatprep.subr.bf16.mxu1 %v1996_v42  ;;  %v1447_v53 = vsel %vm840_vm7, %v3410_v6, %v1434_v15  ;;  %v3520_v15 = vld [vmem:[%s3802_s3] sm:$0xff]  ;;  %v3523_v42 = vmul.f32 %v1286_v48, %v3068_v5  ;;  %v1321_v5 = vsel %vm536_vm3, %v3373_v14, %v3412_v18 }
 0x2cd   : > { %1999 = vmatpush1.bf16.msra.mxu1 %v1998_v32  ;;  %v1453_v33 = vmul.f32 %v1447_v53, %v2892_v50  ;;  %v1324_v17 = vmul.f32 %v1321_v5, %v3927_v35  ;;  %v1352_v18 = vsel %vm612_vm4, %v3423_v36, %v3359_v21  ;;  %v3932_v5 = vld [vmem:[#allocation14_spill] sm:$0xff] }
 0x2ce   : > { %v1218_v28 = vpop.permute.xlu0 %1217  ;;  %2001 = vmatprep.subr.bf16.mxu1 %v2000_v25  ;;  %v3499_v9 = vpop.permute.xlu1 %1215  ;;  %3926 = vst [vmem:[#allocation17_spill] sm:$0xff] %v3523_v42  ;;  %v1292_v35 = vmul.f32 %v1289_v31, %v3932_v5 }
 0x2cf   : > { %v1219_v12 = vsel %vm309_vm1, %v3499_v9, %v1218_v28 }
 0x2d0   : > { %v1234_v16 = vmul.f32 %v1219_v12, %v3929_v22 }
 0x2d1   : > { %2003 = vmatpush1.bf16.msra.mxu1 %v2002_v58  ;;  %v3928_v58 = vld [vmem:[#allocation12_spill] sm:$0xff] }
 0x2d2   : > { %v3509_v37 = vpop.permute.xlu0 %1281  ;;  %1556 = vmatprep.subr.mxu1 %v1454_v34  ;;  %v3511_v47 = vpop.permute.xlu1 %1307  ;;  %v3930_v34 = vld [vmem:[#allocation13_spill] sm:$0xff] }
 0x2d3   : > { %v1318_v63 = vsel %vm536_vm3, %v1306_v7, %v3511_v47  ;;  %v1290_v21 = vsel %vm460_vm2, %v3509_v37, %v3363_v1  ;;  %v1416_v1 = vsel %vm764_vm6, %v3437_v19, %v3402_v29 }
 0x2d4   : > { %v3526_v27 = vmul.f32 %v1318_v63, %v3058_v52  ;;  %v1226_v52 = vsel %vm309_vm1, %v1218_v28, %v3350_v59 }
 0x2d5   : > { %1557 = vmatpush1.msra.mxu1 %v1453_v33  ;;  %v1227_v53 = vmul.f32 %v1226_v52, %v3928_v58  ;;  %v3931_v33 = vld [vmem:[#allocation25_spill] sm:$0xff]  ;;  %v3935_v58 = vld [vmem:[#allocation19_spill] sm:$0xff] }
 0x2d6   : > { %v3530_v50 = vpop.permute.xlu0 %1375  ;;  %1898 = vmatmul.mubr.msk.f32.vlgmr.msra.gmra.mrb[4].mxu1 %vm907_vm8, %v3520_v15  ;;  %v3534_v7 = vpop.permute.xlu1 %1311  ;;  %v3933_v52 = vld [vmem:[#allocation21_spill] sm:$0xff] }
 0x2d7   : > { %1746 = vmatprep.mubr.f32.mxu1 %v3892_v57  ;;  %v1356_v12 = vmul.f32 %v1352_v18, %v3933_v52 }
 0x2da   : > { %v1214_v40 = vpop.permute.xlu0 %1213  ;;  %v1250_v25 = vpop.permute.xlu1 %1249 }
 0x2db   : > { %v1251_v59 = vsel %vm384_vm0, %v3441_v43, %v1250_v25  ;;  %v1258_v28 = vsel %vm384_vm0, %v1250_v25, %v3348_v20  ;;  %v1353_v20 = vsel %vm612_vm4, %v3380_v23, %v3423_v36  ;;  %v1976_v25 = vpack.c.bf16 %v1324_v17, %v1292_v35  ;;  %v3936_v36 = vld [vmem:[#allocation23_spill] sm:$0xff] }
 0x2dc   : > { %v1259_v48 = vmul.f32 %v1258_v28, %v3930_v34  ;;  %v1266_v63 = vmul.f32 %v1251_v59, %v3931_v33  ;;  %v3934_v59 = vld [vmem:[#allocation18_spill] sm:$0xff]  ;;  %v1355_v22 = vmul.f32 %v1353_v20, %v3936_v36  ;;  %v1417_v17 = vsel %vm764_vm6, %v3406_v30, %v3437_v19 }
 0x2dd   : > { %v1291_v28 = vmul.f32 %v1290_v21, %v3934_v59  ;;  %v1420_v34 = vmul.f32 %v1416_v1, %v2908_v56  ;;  %v3938_v33 = vld [vmem:[#allocation30_spill] sm:$0xff]  ;;  %v3939_v21 = vld [vmem:[#allocation31_spill] sm:$0xff]  ;;  %v1448_v56 = vsel %vm840_vm7, %v3443_v51, %v3410_v6  ;;  %v1220_v52 = vsel %vm309_vm1, %v1214_v40, %v3499_v9 }
 0x2de   : > { %v1974_v32 = vpack.c.bf16 %v1259_v48, %v1227_v53  ;;  %v1310_v3 = vpop.permute.xlu0 %1309  ;;  %v1314_v24 = vpop.permute.xlu1 %1313  ;;  %v2020_v42 = vpack.c.bf16 %v1266_v63, %v1234_v16  ;;  %v3937_v48 = vld [vmem:[#allocation29_spill] sm:$0xff]  ;;  %v1419_v63 = vmul.f32 %v1417_v17, %v3938_v33  ;;  %v1982_v19 = vpack.c.bf16 %v1355_v22, %v3212_v2 }
 0x2df   : > { %v1322_v31 = vsel %vm536_vm3, %v1314_v24, %v3373_v14  ;;  %v1384_v14 = vsel %vm688_vm5, %v3431_v49, %v3394_v4  ;;  %v1449_v6 = vsel %vm840_vm7, %v3369_v38, %v3443_v51  ;;  %v3943_v22 = vld [vmem:[#allocation33_spill] sm:$0xff] }
 0x2e0   : > { %v1323_v53 = vmul.f32 %v1322_v31, %v3935_v58  ;;  %1975 = vmatpush1.bf16.msra.mxu0 %v1974_v32  ;;  %2021 = vmatprep.subr.bf16.mxu1 %v2020_v42  ;;  %v1980_v42 = vpack.c.bf16 %v1356_v12, %v3232_v45  ;;  %v1385_v32 = vsel %vm688_vm5, %v3365_v39, %v3431_v49 }
 0x2e1   : > { %1977 = vmatprep.subr.bf16.mxu0 %v1976_v25  ;;  %v1388_v4 = vmul.f32 %v1384_v14, %v3937_v48  ;;  %v1387_v20 = vmul.f32 %v1385_v32, %v3939_v21  ;;  %v1221_v45 = vsel %vm309_vm1, %v3478_v61, %v1214_v40  ;;  %v1315_v12 = vsel %vm536_vm3, %v3534_v7, %v1314_v24  ;;  %v3940_v25 = vld [vmem:[#allocation27_spill] sm:$0xff] }
 0x2e2   : > { %v1978_v29 = vpack.c.bf16 %v1323_v53, %v1291_v28  ;;  %v1342_v18 = vpop.permute.xlu0 %1341  ;;  %v1344_v16 = vpop.permute.xlu1 %1343  ;;  %v1452_v31 = vmul.f32 %v1448_v56, %v2997_v0  ;;  %v1283_v61 = vsel %vm460_vm2, %v3476_v62, %v3509_v37  ;;  %v1232_v9 = vmul.f32 %v1221_v45, %v3023_v26  ;;  %v3941_v26 = vld [vmem:[#allocation32_spill] sm:$0xff] }
 0x2e3   : > { %v1984_v49 = vpack.c.bf16 %v1420_v34, %v1388_v4  ;;  %v1986_v2 = vpack.c.bf16 %v1419_v63, %v1387_v20  ;;  %v1233_v1 = vmul.f32 %v1220_v52, %v3940_v25  ;;  %v1317_v24 = vsel %vm536_vm3, %v3511_v47, %v1310_v3  ;;  %v3942_v53 = vld [vmem:[#allocation28_spill] sm:$0xff]  ;;  %v3946_v4 = vld [vmem:[#allocation35_spill] sm:$0xff] }
 0x2e4   : > { %1979 = vmatpush1.bf16.msra.mxu0 %v1978_v29  ;;  %v1316_v37 = vsel %vm536_vm3, %v1310_v3, %v3534_v7  ;;  %v1330_v59 = vmul.f32 %v1315_v12, %v3941_v26  ;;  %v1451_v47 = vmul.f32 %v1449_v6, %v3041_v8  ;;  %v1328_v14 = vmul.f32 %v1317_v24, %v3062_v41  ;;  %v3944_v29 = vld [vmem:[#allocation34_spill] sm:$0xff]  ;;  %v3945_v41 = vld [vmem:[#allocation36_spill] sm:$0xff] }
 0x2e5   : > { %1981 = vmatprep.subr.bf16.mxu0 %v1980_v42  ;;  %v1348_v3 = vsel %vm612_vm4, %v1342_v18, %v1344_v16  ;;  %v1329_v34 = vmul.f32 %v1316_v37, %v3944_v29  ;;  %v3949_v45 = vpack.c.bf16 %v3488_v55, %v3491_v13  ;;  %v3952_v13 = vld [vmem:[#allocation53_spill] sm:$0xff] }
 0x2e6   : > { %v1346_v5 = vpop.permute.xlu0 %1345  ;;  %v1408_v35 = vpop.permute.xlu1 %1407 }
 0x2e7   : > { %v1347_v8 = vsel %vm612_vm4, %v1344_v16, %v1346_v5  ;;  %v1349_v16 = vsel %vm612_vm4, %v3455_v60, %v1342_v18 }
 0x2e8   : > { %1983 = vmatpush1.bf16.msra.mxu0 %v1982_v19  ;;  %v3947_v19 = vld [vmem:[#allocation44_spill] sm:$0xff] }
 0x2e9   : > { %1985 = vmatprep.subr.bf16.mxu0 %v1984_v49  ;;  %v3950_v49 = vld [vmem:[#allocation54_spill] sm:$0xff] }
 0x2ea   : > { %v1246_v40 = vpop.permute.xlu1 %1245  ;;  %v1406_v28 = vpop.permute.xlu0 %1405 }
 0x2eb   : > { %v1252_v51 = vsel %vm384_vm0, %v1246_v40, %v3441_v43  ;;  %v1253_v0 = vsel %vm384_vm0, %v3439_v54, %v1246_v40  ;;  %v1298_v43 = vmul.f32 %v1283_v61, %v3943_v22  ;;  %v1354_v54 = vsel %vm612_vm4, %v1346_v5, %v3380_v23  ;;  %v3953_v61 = vld [vmem:[#allocation56_spill] sm:$0xff] }
 0x2ec   : > { %v1264_v58 = vmul.f32 %v1253_v0, %v3009_v10  ;;  %v1265_v36 = vmul.f32 %v1252_v51, %v3942_v53  ;;  %1987 = vmatpush1.bf16.msra.mxu0 %v1986_v2  ;;  %v1362_v32 = vmul.f32 %v1354_v54, %v3945_v41  ;;  %v1360_v5 = vmul.f32 %v1348_v3, %v3947_v19  ;;  %v3951_v2 = vld [vmem:[#allocation43_spill] sm:$0xff]  ;;  %v3956_v51 = vld [vmem:[#allocation57_spill] sm:$0xff]  ;;  %v3960_v53 = vld [vmem:[#allocation40_spill] sm:$0xff] }
 0x2ed   : > { %1485 = vmatprep.subr.mxu0 %v1452_v31  ;;  %v2024_v63 = vpack.c.bf16 %v1330_v59, %v1298_v43  ;;  %v1412_v18 = vsel %vm764_vm6, %v1406_v28, %v1408_v35  ;;  %v1359_v12 = vmul.f32 %v1349_v16, %v3951_v2  ;;  %v3957_v0 = vld [vmem:[#allocation49_spill] sm:$0xff]  ;;  %v3963_v54 = vld [vmem:[#allocation39_spill] sm:$0xff]  ;;  %v3964_v3 = vld [vmem:[#allocation52_spill] sm:$0xff] }
 0x2ee   : > { %v2022_v7 = vpack.c.bf16 %v1265_v36, %v1233_v1  ;;  %v1278_v17 = vpop.permute.xlu1 %1277  ;;  %v2004_v10 = vpack.c.bf16 %v1264_v58, %v1232_v9  ;;  %v1410_v21 = vpop.permute.xlu0 %1409  ;;  %v2028_v52 = vpack.c.bf16 %v1362_v32, %v3950_v49  ;;  %v3954_v9 = vld [vmem:[#allocation46_spill] sm:$0xff]  ;;  %v3955_v1 = vld [vmem:[#allocation55_spill] sm:$0xff]  ;;  %v1424_v37 = vmul.f32 %v1412_v18, %v3957_v0  ;;  %v3962_v43 = vld [vmem:[#allocation41_spill] sm:$0xff] }
 0x2ef   : > { %v1284_v42 = vsel %vm460_vm2, %v1278_v17, %v3476_v62  ;;  %v1285_v23 = vsel %vm460_vm2, %v3453_v44, %v1278_v17  ;;  %v3948_v62 = vld [vmem:[#allocation37_spill] sm:$0xff]  ;;  %v1411_v6 = vsel %vm764_vm6, %v1408_v35, %v1410_v21  ;;  %v1418_v55 = vsel %vm764_vm6, %v1410_v21, %v3406_v30  ;;  %v3967_v41 = vld [vmem:[#allocation50_spill] sm:$0xff] }
 0x2f0   : > { %v1296_v48 = vmul.f32 %v1285_v23, %v3072_v46  ;;  %v1297_v33 = vmul.f32 %v1284_v42, %v3946_v4  ;;  %1486 = vmatpush1.msra.mxu0 %v1451_v47  ;;  %2023 = vmatpush1.bf16.msra.mxu1 %v2022_v7  ;;  %v1361_v44 = vmul.f32 %v1347_v8, %v3948_v62  ;;  %v3958_v30 = vld [vmem:[#allocation17_spill] sm:$0xff]  ;;  %v3961_v47 = vld [vmem:[#allocation38_spill] sm:$0xff]  ;;  %v3965_v7 = vld [vmem:[#allocation47_spill] sm:$0xff] }
 0x2f1   : > { %1897 = vmatmul.mubr.msk.f32.vlgmr.msra.gmra.mrb[4].mxu0 %vm907_vm8, %v3520_v15  ;;  %2005 = vmatprep.subr.bf16.mxu0 %v2004_v10  ;;  %v2012_v24 = vpack.c.bf16 %v1360_v5, %v3955_v1  ;;  %v1413_v35 = vsel %vm764_vm6, %v3956_v51, %v1406_v28  ;;  %v3959_v26 = vpack.c.bf16 %v3526_v27, %v3958_v30  ;;  %v3968_v4 = vld [vmem:[#allocation58_spill] sm:$0xff]  ;;  %v3969_v5 = vld [vmem:[#allocation45_spill] sm:$0xff] }
 0x2f2   : > { %v2026_v20 = vpack.c.bf16 %v1329_v34, %v1297_v33  ;;  %2025 = vmatprep.subr.bf16.mxu1 %v2024_v63  ;;  %v1374_v46 = vpop.permute.xlu1 %1373  ;;  %v2008_v56 = vpack.c.bf16 %v1328_v14, %v1296_v48  ;;  %2007 = vmatpush1.bf16.msra.mxu0 %v3949_v45  ;;  %v2030_v31 = vpack.c.bf16 %v1361_v44, %v3952_v13  ;;  %v1440_v10 = vpop.permute.xlu0 %1439  ;;  %v3970_v44 = vld [vmem:[#allocation42_spill] sm:$0xff] }
 0x2f3   : > { %v1380_v60 = vsel %vm688_vm5, %v1374_v46, %v3530_v50  ;;  %1675 = vmatprep.mubr.f32.mxu0 %v3892_v57  ;;  %v1381_v57 = vsel %vm688_vm5, %v3953_v61, %v1374_v46  ;;  %v1425_v36 = vmul.f32 %v1411_v6, %v3960_v53  ;;  %v1426_v22 = vmul.f32 %v1418_v55, %v3961_v47 }
 0x2f4   : > { %2009 = vmatprep.subr.bf16.mxu0 %v2008_v56  ;;  %2027 = vmatpush1.bf16.msra.mxu1 %v2026_v20  ;;  %v1392_v40 = vmul.f32 %v1380_v60, %v3954_v9  ;;  %v2014_v27 = vpack.c.bf16 %v1359_v12, %v3964_v3  ;;  %v1391_v17 = vmul.f32 %v1381_v57, %v3965_v7  ;;  %v3971_v20 = vld [vmem:[#allocation51_spill] sm:$0xff]  ;;  %v2107_v12 = vld [vmem:[%s2440_s19 + $0x18] sm:$0xff] }
 0x2f5   : > { %2029 = vmatprep.subr.bf16.mxu1 %v2028_v52  ;;  %v2106_v52 = vld [vmem:[%s2440_s19 + $0x10] sm:$0xff] }
 0x2f6   : > { %v1378_v25 = vpop.permute.xlu1 %1377  ;;  %2011 = vmatpush1.bf16.msra.mxu0 %v3959_v26  ;;  %v2016_v34 = vpack.c.bf16 %v1424_v37, %v1392_v40 }
 0x2f7   : > { %v1379_v59 = vsel %vm688_vm5, %v3530_v50, %v1378_v25  ;;  %v1386_v58 = vsel %vm688_vm5, %v1378_v25, %v3365_v39  ;;  %2013 = vmatprep.subr.bf16.mxu0 %v2012_v24  ;;  %v3966_v39 = vld [vmem:[#allocation48_spill] sm:$0xff]  ;;  %v2108_v25 = vld [vmem:[%s2440_s19] sm:$0xff] }
 0x2f8   : > { %v1393_v28 = vmul.f32 %v1379_v59, %v3962_v43  ;;  %v1394_v14 = vmul.f32 %v1386_v58, %v3963_v54  ;;  %2031 = vmatpush1.bf16.msra.mxu1 %v2030_v31  ;;  %v1423_v42 = vmul.f32 %v1413_v35, %v3966_v39  ;;  %v2109_v24 = vld [vmem:[%s2440_s19 + $0x8] sm:$0xff] }
 0x2fa   : > { %v2034_v50 = vpack.c.bf16 %v1425_v36, %v1393_v28  ;;  %v1438_v29 = vpop.permute.xlu1 %1437  ;;  %v2032_v8 = vpack.c.bf16 %v1426_v22, %v1394_v14  ;;  %2015 = vmatpush1.bf16.msra.mxu0 %v2014_v27  ;;  %v2018_v48 = vpack.c.bf16 %v1423_v42, %v1391_v17  ;;  %v2110_v14 = vld [vmem:[%s2440_s19 + $0x20] sm:$0xff]  ;;  %v2111_v27 = vld [vmem:[%s2440_s19 + $0x30] sm:$0xff]  ;;  %v2112_v17 = vld [vmem:[%s2440_s19 + $0x28] sm:$0xff] }
 0x2fb   : > { %v1444_v23 = vsel %vm840_vm7, %v1438_v29, %v1440_v10  ;;  %2017 = vmatprep.subr.bf16.mxu0 %v2016_v34  ;;  %v1445_v33 = vsel %vm840_vm7, %v3968_v4, %v1438_v29 }
 0x2fc   : > { %v1456_v32 = vmul.f32 %v1444_v23, %v3967_v41  ;;  %2033 = vmatprep.subr.bf16.mxu1 %v2032_v8  ;;  %v1455_v46 = vmul.f32 %v1445_v33, %v3971_v20 }
 0x2fd   : > { %2035 = vmatpush1.bf16.msra.mxu1 %v2034_v50  ;;  %v2113_v50 = vld [vmem:[%s2440_s19 + $0x38] sm:$0xff]  ;;  %s2172_s19 = scalar_lea.vmem %s3753_s17, 1024 }
 0x2fe   : > { %v1442_v63 = vpop.permute.xlu1 %1441  ;;  %2019 = vmatpush1.bf16.msra.mxu0 %v2018_v48  ;;  %p2173_p4 = scmp.ne.s32.totalorder %s3753_s17, %s2172_s19  ;;  %p2180_p13 = scmp.lt.s32.totalorder %s2178_s12, %s2172_s19 }
 0x2ff   : > { %v1443_v16 = vsel %vm840_vm7, %v1440_v10, %v1442_v63  ;;  %v1450_v19 = vsel %vm840_vm7, %v1442_v63, %v3369_v38  ;;  %1627 = vmatprep.subr.mxu0 %v1456_v32 }
 0x300   : > { %v1457_v62 = vmul.f32 %v1443_v16, %v3969_v5  ;;  %v1458_v21 = vmul.f32 %v1450_v19, %v3970_v44  ;;  %p2174_p6 = pnand %p2173_p4, %p2385_p12  ;;  %p2181_p3 = por %p2180_p13, %p2179_p10 }
 0x302   : > { %1698 = vmatprep.subr.mxu1 %v1458_v21  ;;  %1628 = vmatpush1.msra.mxu0 %v1455_v46  ;;  %p2175_p8 = pneg %p2174_p6 }
 0x303   : > { %1699 = vmatpush1.msra.mxu1 %v1457_v62  ;;  %1899 = vmatmul.mubr.msk.f32.vlgmr.msra.gmra.mrb[6].mxu0 %vm907_vm8, %v3520_v15  ;;  %v1464_v11 = vpop.permute.xlu0 %1463 }
 0x304   : > { %1900 = vmatmul.mubr.msk.f32.vlgmr.msra.gmra.mrb[6].mxu1 %vm907_vm8, %v3520_v15  ;;  %p2182_p7 = pnand %p2181_p3, %p2175_p8 }
 0x3a9   : > { %v1606_v38 = vpop.f32.mrb[4].mxu1 }
 0x3aa   : > { %v1607_v56 = vadd.f32 %v1606_v38, %v1464_v11  ;;  %v1608_v45 = vpop.f32.mrb[5].mxu1 }
 0x3ab   : > { %v1609_v60 = vadd.f32 %v1608_v45, %v1464_v11 }
 0x3ac   : > { %v1755_v18 = vmax.f32 %v1607_v56, 0.0 }
 0x3ad   : > { %v1756_v49 = vmax.f32 %v1609_v60, 0.0 }
 0x3ae   : > { %v1763_v2 = vadd.f32 %v2106_v52, %v1755_v18 }
 0x3af   : > { %v1764_v6 = vadd.f32 %v2107_v12, %v1756_v49 }
 0x3b0   : > { %v1771_v55 = vmax.f32 %v1763_v2, 0.0 }
 0x3b1   : > { %v1772_v13 = vmax.f32 %v1764_v6, 0.0 }
 0x3b2   : > { %1779 = vst [vmem:[%s3734_s16 + $0x10] sm:$0xff] %v1771_v55 }
 0x3b3   : > { %1780 = vst [vmem:[%s3734_s16 + $0x18] sm:$0xff] %v1772_v13 }
 0x3c4   : > { %v1535_v15 = vpop.f32.mrb[4].mxu0 }
 0x3c5   : > { %v1536_v31 = vadd.f32 %v1535_v15, %v1464_v11  ;;  %v1537_v61 = vpop.f32.mrb[5].mxu0 }
 0x3c6   : > { %v1538_v57 = vadd.f32 %v1537_v61, %v1464_v11 }
 0x3c7   : > { %v1753_v9 = vmax.f32 %v1536_v31, 0.0 }
 0x3c8   : > { %v1754_v40 = vmax.f32 %v1538_v57, 0.0 }
 0x3c9   : > { %v1761_v1 = vadd.f32 %v2108_v25, %v1753_v9 }
 0x3ca   : > { %v1762_v51 = vadd.f32 %v2109_v24, %v1754_v40 }
 0x3cb   : > { %v1769_v35 = vmax.f32 %v1761_v1, 0.0 }
 0x3cc   : > { %v1770_v0 = vmax.f32 %v1762_v51, 0.0 }
 0x3cd   : > { %1777 = vst [vmem:[%s3734_s16] sm:$0xff] %v1769_v35 }
 0x3ce   : > { %1778 = vst [vmem:[%s3734_s16 + $0x8] sm:$0xff] %v1770_v0 }
 0x3d6   : > { %v1677_v37 = vpop.f32.mrb[6].mxu0 }
 0x3d7   : > { %v1748_v30 = vpop.f32.mrb[6].mxu1  ;;  %v1678_v26 = vadd.f32 %v1677_v37, %v1464_v11  ;;  %v1679_v59 = vpop.f32.mrb[7].mxu0 }
 0x3d8   : > { %v1749_v58 = vadd.f32 %v1748_v30, %v1464_v11  ;;  %v1750_v53 = vpop.f32.mrb[7].mxu1  ;;  %v1680_v36 = vadd.f32 %v1679_v59, %v1464_v11 }
 0x3d9   : > { %v1751_v47 = vadd.f32 %v1750_v53, %v1464_v11  ;;  %v1757_v22 = vmax.f32 %v1678_v26, 0.0 }
 0x3da   : > { %v1759_v43 = vmax.f32 %v1749_v58, 0.0  ;;  %v1758_v28 = vmax.f32 %v1680_v36, 0.0 }
 0x3db   : > { %v1760_v54 = vmax.f32 %v1751_v47, 0.0  ;;  %v1765_v3 = vadd.f32 %v2110_v14, %v1757_v22 }
 0x3dc   : > { %v1767_v7 = vadd.f32 %v2111_v27, %v1759_v43  ;;  %v1766_v10 = vadd.f32 %v2112_v17, %v1758_v28 }
 0x3dd   : > { %v1768_v29 = vadd.f32 %v2113_v50, %v1760_v54  ;;  %v1773_v34 = vmax.f32 %v1765_v3, 0.0 }
 0x3de   : > { %v1775_v8 = vmax.f32 %v1767_v7, 0.0  ;;  %v1774_v39 = vmax.f32 %v1766_v10, 0.0 }
 0x3df   : > { %v1776_v42 = vmax.f32 %v1768_v29, 0.0  ;;  %1781 = vst [vmem:[%s3734_s16 + $0x20] sm:$0xff] %v1773_v34 }
 0x3e0   : > { %1783 = vst [vmem:[%s3734_s16 + $0x30] sm:$0xff] %v1775_v8  ;;  %1782 = vst [vmem:[%s3734_s16 + $0x28] sm:$0xff] %v1774_v39 }
 0x3e1   : > { %1784 = vst [vmem:[%s3734_s16 + $0x38] sm:$0xff] %v1776_v42 }
 0x3e2   : > { %2185 = shalt.err (!%p2182_p7)
}
 0x3e3   : > { %s2186_s26 = scalar_lea.hbm %s3751_s18, 1024  ;;  %s2190_s29 = scalar_lea.hbm %s3805_s6, 2048 }
 0x3e4   : > { %p2187_p9 = scmp.ne.s32.totalorder %s3751_s18, %s2186_s26  ;;  %p2191_p0 = scmp.lt.u32.totalorder %s3751_s18, %s3805_s6 }
 0x3e5   : > { %p2192_p1 = scmp.lt.u32.totalorder %s2190_s29, %s2186_s26  ;;  %p2194_p4 = scmp.lt.u32.totalorder %s2186_s26, %s3751_s18 }
 0x3e6   : > { %p2188_p2 = pnand %p2187_p9, %p2385_p12 }
 0x3e7   : > { %p2193_p11 = por %p2192_p1, %p2191_p0 }
 0x3e8   : > { %p2189_p5 = pneg %p2188_p2 }
 0x3e9   : > { %p2195_p6 = por %p2194_p4, %p2193_p11 }
 0x3eb   : > { %p2196_p8 = pnand %p2195_p6, %p2189_p5 }
 0x3ed   : > { %2199 = shalt.err (!%p2196_p8)
}
 0x3ee   : > { %2042 = dma.vmem_to_hbm [thread:$0]  (%p2385_p12), %s3753_s17, 1024, %s3751_s18, %s1786_s25  }
 0x3ef PF: > { %s1812_s11 = sand.u32 1, %s2230_s21   ;;  %p3972_p10 = scmp.ne.s32.totalorder %s3861_s28, 0 }
 0x3f0   : > { %p3973_p13 = scmp.ge.s32.totalorder %s2242_s24, 2  ;;  %s1813_s8 = scalar_lea.sflag [#allocation4], %s1812_s11 }
 0x3f2   : > { %p2053_p3 = pnand %p3973_p13, %p3972_p10 }
 0x3f4   : > { %2225 = dma.done.wait (!%p2053_p3), %s1813_s8, 1024  }
 0x3f5   : > { %2227 = vsyncadd (!%p2053_p3), %s1813_s8, 4294966272  ;;  %p20_p7 = scmp.ge.s32.totalorder %s2350_s9, 4   ;;  %s3974_s21 = smov %s2234_s22 }
 0x3f6   : > { %s3975_s22 = smov %s2238_s23  ;;  %s3976_s23 = smov %s2381_s13 }
 0x3f7   : > { %s3977_s24 = smov %s2350_s9  ;;  %22 = sbr.rel (!%p20_p7) target bundleno = 6 (0x6), region = 101 }
 0x3fe   :  { %1818 = vsyncpa [#allocation3], 1 }
 0x3ff   :  { %1820 = vsyncpa [#allocation3 + $0x1], 1 }
 0x400   :  { %1821 = vsyncpa [#allocation6], 1 }
 0x401   :  { %1823 = vsyncpa [#allocation6 + $0x1], 1 }
 0x402   :  { %1824 = vsyncpa [#allocation4], 1 }
 0x403   :  { %1826 = vsyncpa [#allocation4 + $0x1], 1 }

</bundles_post_ra>
